<compile_context>
chip_gen: v7x
topology: tpu7x:2x2x1
jax: 0.10.0
libtpu: 0.0.40
codegen_flags: <defaults>
</compile_context>

<pallas_src>
import functools

import jax
import jax.numpy as jnp
from jax.experimental import pallas as pl
from jax.experimental.pallas import tpu as pltpu

BN_EPS = 1e-5


def _bn_relu(y, g, bt):
    """BatchNorm1d (batch statistics) + ReLU; y is (B, N) f32, g/bt broadcast."""
    mean = jnp.mean(y, axis=0, keepdims=True)
    var = jnp.mean(jnp.square(y - mean), axis=0, keepdims=True)
    return jnp.maximum((y - mean) * jax.lax.rsqrt(var + BN_EPS) * g + bt, 0.0)


# ---------------------------------------------------------------------------
# Fused kernel for the full layer=3 forward.
# ---------------------------------------------------------------------------
def _fused_metagen_kernel(x_ref, w1_ref, b1_ref, g1_ref, bt1_ref,
                          w2_ref, b2_ref, g2_ref, bt2_ref,
                          w3_ref, b3_ref,
                          o_ref, h1_ref, acc2_ref):
    k = pl.program_id(0)
    n_slabs, _, tk = h1_ref.shape  # static: (H // tk2, B, tk2)

    @pl.when(k == 0)
    def _():
        # Layer 1: (B, F) @ (F, H) + bias -> BN -> ReLU.  Cast to bf16 once and
        # store slab-major so per-step reads are leading-dim indexed (no
        # dynamic lane slicing / no per-step cast).
        y1 = jnp.dot(x_ref[...].astype(jnp.bfloat16), w1_ref[...],
                     preferred_element_type=jnp.float32) + b1_ref[...]
        h1 = _bn_relu(y1, g1_ref[...], bt1_ref[...]).astype(jnp.bfloat16)
        for s in range(n_slabs):  # static unroll (n_slabs == 2 by default)
            h1_ref[s] = h1[:, s * tk:(s + 1) * tk]
        acc2_ref[...] = jnp.zeros_like(acc2_ref)

    # Layer 2 partial product for this K-slab of W2.
    acc2_ref[...] += jnp.dot(h1_ref[k], w2_ref[...],
                             preferred_element_type=jnp.float32)

    @pl.when(k == pl.num_programs(0) - 1)
    def _():
        # Layer 2 finalize + layer 3 + L2 normalize (Normalize(power=2)).
        h2 = _bn_relu(acc2_ref[...] + b2_ref[...], g2_ref[...], bt2_ref[...])
        y3 = jnp.dot(h2.astype(jnp.bfloat16), w3_ref[...],
                     preferred_element_type=jnp.float32) + b3_ref[...]
        # No epsilon, matching PyTorch's x.div(norm) (an all-zero row -> NaN).
        norm = jnp.sqrt(jnp.sum(y3 * y3, axis=1, keepdims=True))
        o_ref[...] = y3 / norm


def fused_metagen(x, p, *, tk2=1024):
    B, F = x.shape
    H = p["w1_t"].shape[1]
    assert p["w1_t"].shape == (F, H) and p["w2_t"].shape == (H, H)
    assert p["w3_t"].shape == (H, F) and H % tk2 == 0
    n_slabs = H // tk2
    grid = (n_slabs,)

    # Constant-index residents: single-buffered (no wasted second VMEM buffer).
    def resident(shape):
        return pl.BlockSpec(shape, lambda k: (0, 0),
                            pipeline_mode=pl.Buffered(1))

    return pl.pallas_call(
        _fused_metagen_kernel,
        out_shape=jax.ShapeDtypeStruct((B, F), jnp.float32),
        grid_spec=pltpu.PrefetchScalarGridSpec(
            num_scalar_prefetch=0,
            grid=grid,
            in_specs=[
                resident((B, F)),                           # x (resident)
                resident((F, H)),                           # W1^T bf16 (resident)
                resident((1, H)),                           # b1
                resident((1, H)),                           # gamma1
                resident((1, H)),                           # beta1
                pl.BlockSpec((tk2, H), lambda k: (k, 0)),   # W2^T bf16 K-slab (streamed)
                resident((1, H)),                           # b2
                resident((1, H)),                           # gamma2
                resident((1, H)),                           # beta2
                resident((H, F)),                           # W3^T bf16 (resident)
                resident((1, F)),                           # b3
            ],
            out_specs=pl.BlockSpec((B, F), lambda k: (0, 0)),
            scratch_shapes=[
                pltpu.VMEM((n_slabs, B, tk2), jnp.bfloat16),  # h1 (slab-major, bf16)
                pltpu.VMEM((B, H), jnp.float32),              # layer-2 accumulator
            ],
        ),
        compiler_params=pltpu.CompilerParams(
            dimension_semantics=("arbitrary",)),
    )(x, p["w1_t"], p["b1"], p["g1"], p["bt1"],
      p["w2_t"], p["b2"], p["g2"], p["bt2"],
      p["w3_t"], p["b3"])


# ---------------------------------------------------------------------------
# Standalone kernels for the layer=1 / layer=2 early-exit paths.
# ---------------------------------------------------------------------------
def _linear_bn_relu_fullk_kernel(x_ref, w_ref, b_ref, g_ref, bt_ref, o_ref):
    # Whole K fits in one block: no K grid, no accumulator scratch.
    y = jnp.dot(x_ref[...].astype(jnp.bfloat16), w_ref[...],
                preferred_element_type=jnp.float32) + b_ref[...]
    o_ref[...] = _bn_relu(y, g_ref[...], bt_ref[...])


def linear_bn_relu_fullk(x, w_t, b, g, bt, *, tn):
    B, K = x.shape
    N = w_t.shape[1]
    assert N % tn == 0
    grid = (N // tn,)
    return pl.pallas_call(
        _linear_bn_relu_fullk_kernel,
        out_shape=jax.ShapeDtypeStruct((B, N), jnp.float32),
        grid_spec=pltpu.PrefetchScalarGridSpec(
            num_scalar_prefetch=0,
            grid=grid,
            in_specs=[
                pl.BlockSpec((B, K), lambda n: (0, 0)),
                pl.BlockSpec((K, tn), lambda n: (0, n)),
                pl.BlockSpec((1, tn), lambda n: (0, n)),
                pl.BlockSpec((1, tn), lambda n: (0, n)),
                pl.BlockSpec((1, tn), lambda n: (0, n)),
            ],
            out_specs=pl.BlockSpec((B, tn), lambda n: (0, n)),
        ),
        compiler_params=pltpu.CompilerParams(
            dimension_semantics=("parallel",)),
    )(x, w_t, b, g, bt)


def _linear_bn_relu_acc_kernel(x_ref, w_ref, b_ref, g_ref, bt_ref, o_ref, acc_ref):
    k = pl.program_id(1)

    @pl.when(k == 0)
    def _():
        acc_ref[...] = jnp.zeros_like(acc_ref)

    acc_ref[...] += jnp.dot(x_ref[...].astype(jnp.bfloat16), w_ref[...],
                            preferred_element_type=jnp.float32)

    @pl.when(k == pl.num_programs(1) - 1)
    def _():
        y = acc_ref[...] + b_ref[...]
        o_ref[...] = _bn_relu(y, g_ref[...], bt_ref[...])


def linear_bn_relu_tiled(x, w_t, b, g, bt, *, tn, tk):
    # TODO(synk): on v7x, shard the N axis across both TensorCores with
    # pltpu.CORE_PARALLEL / pl.core_map; plain "parallel" does not split cores.
    B, K = x.shape
    N = w_t.shape[1]
    assert K % tk == 0 and N % tn == 0
    grid = (N // tn, K // tk)   # default call: (1, 2) -> only 2 grid steps
    return pl.pallas_call(
        _linear_bn_relu_acc_kernel,
        out_shape=jax.ShapeDtypeStruct((B, N), jnp.float32),
        grid_spec=pltpu.PrefetchScalarGridSpec(
            num_scalar_prefetch=0,
            grid=grid,
            in_specs=[
                pl.BlockSpec((B, tk), lambda n, k: (0, k)),
                pl.BlockSpec((tk, tn), lambda n, k: (k, n)),
                pl.BlockSpec((1, tn), lambda n, k: (0, n)),
                pl.BlockSpec((1, tn), lambda n, k: (0, n)),
                pl.BlockSpec((1, tn), lambda n, k: (0, n)),
            ],
            out_specs=pl.BlockSpec((B, tn), lambda n, k: (0, n)),
            scratch_shapes=[pltpu.VMEM((B, tn), jnp.float32)],
        ),
        compiler_params=pltpu.CompilerParams(
            dimension_semantics=("parallel", "arbitrary")),
    )(x, w_t, b, g, bt)


# ---------------------------------------------------------------------------
# Parameter construction (deterministic, PyTorch nn.Linear-style uniform init)
# and one-time packing into kernel layout (transposed, bf16 weights).
# ---------------------------------------------------------------------------
def _linear_params(key, in_f, out_f):
    kw, kb = jax.random.split(key)
    bound = 1.0 / jnp.sqrt(jnp.float32(in_f))
    w = jax.random.uniform(kw, (out_f, in_f), jnp.float32, -bound, bound)
    b = jax.random.uniform(kb, (out_f,), jnp.float32, -bound, bound)
    return w, b


def init_params(key, feat_dim=128, hidden=4096 // 2):
    k1, k2, k3 = jax.random.split(key, 3)
    w1, b1 = _linear_params(k1, feat_dim, hidden)
    w2, b2 = _linear_params(k2, hidden, hidden)
    w3, b3 = _linear_params(k3, hidden, feat_dim)
    return {
        "w1": w1, "b1": b1, "g1": jnp.ones((hidden,), jnp.float32),
        "beta1": jnp.zeros((hidden,), jnp.float32),
        "w2": w2, "b2": b2, "g2": jnp.ones((hidden,), jnp.float32),
        "beta2": jnp.zeros((hidden,), jnp.float32),
        "w3": w3, "b3": b3,
    }


def prepare_params(params):
    """One-time pack: pre-transpose + bf16-cast weights, (1, N) f32 row vectors."""
    row = lambda v: v.reshape(1, -1).astype(jnp.float32)
    return {
        "w1_t": params["w1"].T.astype(jnp.bfloat16),
        "b1": row(params["b1"]), "g1": row(params["g1"]), "bt1": row(params["beta1"]),
        "w2_t": params["w2"].T.astype(jnp.bfloat16),
        "b2": row(params["b2"]), "g2": row(params["g2"]), "bt2": row(params["beta2"]),
        "w3_t": params["w3"].T.astype(jnp.bfloat16),
        "b3": row(params["b3"]),
    }


# ---------------------------------------------------------------------------
# Full forward (== MyMetaGenNet.forward / metagen_net.forward)
# ---------------------------------------------------------------------------
@functools.partial(jax.jit, static_argnames=("layer",))
def my_meta_gen_net_forward(kp, x, layer=3):
    # TODO(synk): the dynamically-created feat_convert_fc (used only when
    # x.shape[1] != feat_dim) creates fresh random weights at call time in the
    # PyTorch code; we require x.shape[1] == feat_dim here.
    if layer == 3:
        return fused_metagen(x, kp, tk2=1024)
    h = linear_bn_relu_fullk(x, kp["w1_t"], kp["b1"], kp["g1"], kp["bt1"],
                             tn=kp["w1_t"].shape[1])
    if layer == 1:
        return h
    H = kp["w2_t"].shape[1]
    return linear_bn_relu_tiled(h, kp["w2_t"], kp["b2"], kp["g2"], kp["bt2"],
                                tn=H, tk=1024)


# ---------------------------------------------------------------------------
# Pure-JAX reference (same bf16-weight / f32-accumulation numerics)
# ---------------------------------------------------------------------------
def _reference_forward(params, x, layer=3):
    def mm(a, w):
        return jnp.dot(a.astype(jnp.bfloat16), w.T.astype(jnp.bfloat16),
                       preferred_element_type=jnp.float32)

    h = _bn_relu(mm(x, params["w1"]) + params["b1"], params["g1"], params["beta1"])
    if layer == 1:
        return h
    h = _bn_relu(mm(h, params["w2"]) + params["b2"], params["g2"], params["beta2"])
    if layer == 2:
        return h
    y = mm(h, params["w3"]) + params["b3"]
    norm = jnp.sqrt(jnp.sum(y * y, axis=1, keepdims=True))
    return y / norm


if __name__ == "__main__":
    FEAT_DIM = 128
    BATCH = 8

    key = jax.random.PRNGKey(0)
    k_param, k_x = jax.random.split(key)
    params = init_params(k_param, feat_dim=FEAT_DIM)
    kparams = prepare_params(params)
    x = jax.random.normal(k_x, (BATCH, FEAT_DIM), jnp.float32)

    for layer in (1, 2, 3):
        out = jax.block_until_ready(my_meta_gen_net_forward(kparams, x, layer=layer))
        ref = _reference_forward(params, x, layer=layer)
        assert out.shape == ref.shape, f"shape mismatch at layer={layer}"
        assert jnp.allclose(out, ref, atol=2e-3, rtol=2e-3), f"mismatch vs reference at layer={layer}"

    print("KERNEL_OK")
</pallas_src>

<mosaic_0001>
module attributes {stable_mosaic.version = 11 : i64} {
  func.func @_linear_bn_relu_fullk_kernel(%arg0: i32, %arg1: memref<8x128xf32, #tpu.memory_space<vmem>>, %arg2: memref<128x2048xbf16, #tpu.memory_space<vmem>>, %arg3: memref<1x2048xf32, #tpu.memory_space<vmem>>, %arg4: memref<1x2048xf32, #tpu.memory_space<vmem>>, %arg5: memref<1x2048xf32, #tpu.memory_space<vmem>>, %arg6: memref<8x2048xf32, #tpu.memory_space<vmem>>) attributes {dimension_semantics = [#tpu.dimension_semantics<parallel>], iteration_bounds = array<i64: 1>, scalar_prefetch = 0 : i64, scratch_operands = 0 : i64, tpu.core_type = #tpu.core_type<tc>, window_params = [{pipeline_mode = #tpu.pipeline_mode<synchronous>, transform_indices = @transform_0, window_bounds = array<i64: 8, 128>}, {transform_indices = @transform_1, window_bounds = array<i64: 128, 2048>}, {transform_indices = @transform_2, window_bounds = array<i64: 1, 2048>}, {transform_indices = @transform_3, window_bounds = array<i64: 1, 2048>}, {transform_indices = @transform_4, window_bounds = array<i64: 1, 2048>}, {transform_indices = @transform_5, window_bounds = array<i64: 8, 2048>}]} {
    %c0 = arith.constant 0 : index
    %c0_0 = arith.constant 0 : index
    %0 = vector.load %arg1[%c0, %c0_0] : memref<8x128xf32, #tpu.memory_space<vmem>>, vector<8x128xf32>
    %1 = arith.truncf %0 : vector<8x128xf32> to vector<8x128xbf16>
    %c0_1 = arith.constant 0 : index
    %c0_2 = arith.constant 0 : index
    %2 = vector.load %arg2[%c0_1, %c0_2] : memref<128x2048xbf16, #tpu.memory_space<vmem>>, vector<128x2048xbf16>
    %cst = arith.constant dense<0.000000e+00> : vector<8x2048xf32>
    %3 = tpu.matmul %1, %2, %cst {dimension_numbers = #tpu.dot_dimension_numbers<[1], [0], [0], [1], [0, 0, 1, 1], [], []>} : vector<8x128xbf16>, vector<128x2048xbf16>, vector<8x2048xf32> -> vector<8x2048xf32>
    %c0_3 = arith.constant 0 : index
    %c0_4 = arith.constant 0 : index
    %4 = vector.load %arg3[%c0_3, %c0_4] : memref<1x2048xf32, #tpu.memory_space<vmem>>, vector<1x2048xf32>
    %5 = vector.broadcast %4 : vector<1x2048xf32> to vector<8x2048xf32>
    %6 = arith.addf %3, %5 : vector<8x2048xf32>
    %c0_5 = arith.constant 0 : index
    %c0_6 = arith.constant 0 : index
    %7 = vector.load %arg4[%c0_5, %c0_6] : memref<1x2048xf32, #tpu.memory_space<vmem>>, vector<1x2048xf32>
    %c0_7 = arith.constant 0 : index
    %c0_8 = arith.constant 0 : index
    %8 = vector.load %arg5[%c0_7, %c0_8] : memref<1x2048xf32, #tpu.memory_space<vmem>>, vector<1x2048xf32>
    %cst_9 = arith.constant dense<0.000000e+00> : vector<2048xf32>
    %9 = vector.multi_reduction <add>, %6, %cst_9 [0] : vector<8x2048xf32> to vector<2048xf32>
    %10 = vector.shape_cast %9 : vector<2048xf32> to vector<1x2048xf32>
    %cst_10 = arith.constant 8.000000e+00 : f32
    %11 = vector.broadcast %cst_10 : f32 to vector<1x2048xf32>
    %12 = arith.divf %10, %11 : vector<1x2048xf32>
    %13 = vector.broadcast %12 : vector<1x2048xf32> to vector<8x2048xf32>
    %14 = arith.subf %6, %13 : vector<8x2048xf32>
    %15 = arith.mulf %14, %14 : vector<8x2048xf32>
    %cst_11 = arith.constant dense<0.000000e+00> : vector<2048xf32>
    %16 = vector.multi_reduction <add>, %15, %cst_11 [0] : vector<8x2048xf32> to vector<2048xf32>
    %17 = vector.shape_cast %16 : vector<2048xf32> to vector<1x2048xf32>
    %cst_12 = arith.constant 8.000000e+00 : f32
    %18 = vector.broadcast %cst_12 : f32 to vector<1x2048xf32>
    %19 = arith.divf %17, %18 : vector<1x2048xf32>
    %20 = vector.broadcast %12 : vector<1x2048xf32> to vector<8x2048xf32>
    %21 = arith.subf %6, %20 : vector<8x2048xf32>
    %cst_13 = arith.constant 9.99999974E-6 : f32
    %22 = vector.broadcast %cst_13 : f32 to vector<1x2048xf32>
    %23 = arith.addf %19, %22 : vector<1x2048xf32>
    %24 = math.rsqrt %23 : vector<1x2048xf32>
    %25 = vector.broadcast %24 : vector<1x2048xf32> to vector<8x2048xf32>
    %26 = arith.mulf %21, %25 : vector<8x2048xf32>
    %27 = vector.broadcast %7 : vector<1x2048xf32> to vector<8x2048xf32>
    %28 = arith.mulf %26, %27 : vector<8x2048xf32>
    %29 = vector.broadcast %8 : vector<1x2048xf32> to vector<8x2048xf32>
    %30 = arith.addf %28, %29 : vector<8x2048xf32>
    %cst_14 = arith.constant 0.000000e+00 : f32
    %31 = vector.broadcast %cst_14 : f32 to vector<8x2048xf32>
    %32 = arith.maximumf %30, %31 : vector<8x2048xf32>
    %c0_15 = arith.constant 0 : index
    %c0_16 = arith.constant 0 : index
    %33 = vector.load %arg6[%c0_15, %c0_16] : memref<8x2048xf32, #tpu.memory_space<vmem>>, vector<8x2048xf32>
    tpu.vector_store %arg6[%c0_15, %c0_16], %32 {strides = array<i32>} : memref<8x2048xf32, #tpu.memory_space<vmem>>, vector<8x2048xf32>,
    return
  }
  func.func @transform_0(%arg0: i32) -> (i32, i32) {
    %c0_i32 = arith.constant 0 : i32
    %c0_i32_0 = arith.constant 0 : i32
    %c0_i32_1 = arith.constant 0 : i32
    return %c0_i32, %c0_i32_0 : i32, i32
  }
  func.func @transform_1(%arg0: i32) -> (i32, i32) {
    %c0_i32 = arith.constant 0 : i32
    %c0_i32_0 = arith.constant 0 : i32
    return %c0_i32, %arg0 : i32, i32
  }
  func.func @transform_2(%arg0: i32) -> (i32, i32) {
    %c0_i32 = arith.constant 0 : i32
    %c0_i32_0 = arith.constant 0 : i32
    return %c0_i32, %arg0 : i32, i32
  }
  func.func @transform_3(%arg0: i32) -> (i32, i32) {
    %c0_i32 = arith.constant 0 : i32
    %c0_i32_0 = arith.constant 0 : i32
    return %c0_i32, %arg0 : i32, i32
  }
  func.func @transform_4(%arg0: i32) -> (i32, i32) {
    %c0_i32 = arith.constant 0 : i32
    %c0_i32_0 = arith.constant 0 : i32
    return %c0_i32, %arg0 : i32, i32
  }
  func.func @transform_5(%arg0: i32) -> (i32, i32) {
    %c0_i32 = arith.constant 0 : i32
    %c0_i32_0 = arith.constant 0 : i32
    return %c0_i32, %arg0 : i32, i32
  }
}

</mosaic_0001>

<bundles_post_ra>
// kernel: my_meta_gen_net_forward.1
= control target key start
LH: loop header
LB: loop body
LE: loop exit
PB: predicated region body
PF: predicated region fallthrough
CT: control target
= control target key end

     0   :  { %10 = vsyncpa [#allocation3], 0  ;;  %s2463_s0 = inlined_call_operand.vmem [shape: f32[8,128], index: 0, kind: input, shape index: {}]   ;;  %s2464_s1 = inlined_call_operand.hbm [shape: bf16[128,2048], index: 1, kind: input, shape index: {}]   ;;  %s2465_s2 = inlined_call_operand.hbm [shape: f32[1,2048], index: 2, kind: input, shape index: {}]   ;;  %s2466_s3 = inlined_call_operand.hbm [shape: f32[1,2048], index: 3, kind: input, shape index: {}]   ;;  %s2467_s4 = inlined_call_operand.hbm [shape: f32[1,2048], index: 4, kind: input, shape index: {}]   ;;  %s2468_s5 = inlined_call_operand.hbm [shape: f32[8,2048], index: 5, kind: output, shape index: {}]  }
   0x1   :  { %11 = vsyncpa [#allocation6], 0 }
   0x2   :  { %12 = vsyncpa [#allocation9], 0 }
   0x3   :  { %13 = vsyncpa [#allocation4], 0  ;;  %s2093_s18 = smov [#allocation5]   ;;  %s2094_s20 = smov [#allocation2]  }
   0x4   :  { %s34_s19 = sshll.u32 %s2093_s18, 4  ;;  %s21_s21 = sshll.u32 %s2094_s20, 4  ;;  %s35_s19 = int_to_ptr.vmem [resolvable:$true] %s34_s19  ;;  %s2131_s21 = int_to_ptr.vmem [resolvable:$true] %s21_s21 }
   0x5   :  { %s1975_s24 = scalar_lea.hbm %s2465_s2, 256 }
   0x6   :  { %p1976_p0 = scmp.ne.s32.totalorder %s2465_s2, %s1975_s24  ;;  %p1979_p1 = scmp.lt.u32.totalorder %s1975_s24, %s2465_s2 }
   0x8   :  { %p1981_p2 = pnand %p1979_p1, %p1976_p0 }
   0xa   :  { %1984 = shalt.err (!%p1981_p2)
}
   0xb   :  { %s1985_s29 = scalar_lea.vmem %s35_s19, 256  ;;  %p1990_p4 = scmp.lt.s32.totalorder %s35_s19, %s35_s19 }
   0xc   :  { %p1986_p3 = scmp.ne.s32.totalorder %s35_s19, %s1985_s29  ;;  %p1991_p5 = scmp.lt.s32.totalorder %s1985_s29, %s1985_s29 }
   0xe   :  { %p1992_p6 = por %p1991_p5, %p1990_p4 }
  0x10   :  { %p1993_p7 = pnand %p1992_p6, %p1986_p3 }
  0x12   :  { %1996 = shalt.err (!%p1993_p7)
}
  0x13   :  { %37 = dma.hbm_to_vmem [thread:$0]  %s2465_s2, 256, %s35_s19, [#allocation6]  }
  0x14   :  { %s1997_s9 = scalar_lea.hbm %s2464_s1, 16384 }
  0x15   :  { %p1998_p8 = scmp.ne.s32.totalorder %s2464_s1, %s1997_s9  ;;  %p2001_p9 = scmp.lt.u32.totalorder %s1997_s9, %s2464_s1 }
  0x17   :  { %p2003_p10 = pnand %p2001_p9, %p1998_p8 }
  0x19   :  { %2006 = shalt.err (!%p2003_p10)
}
  0x1a   :  { %s2007_s14 = scalar_lea.vmem %s2131_s21, 16384  ;;  %p2012_p12 = scmp.lt.s32.totalorder %s2131_s21, %s2131_s21 }
  0x1b   :  { %p2008_p11 = scmp.ne.s32.totalorder %s2131_s21, %s2007_s14  ;;  %p2013_p13 = scmp.lt.s32.totalorder %s2007_s14, %s2007_s14 }
  0x1d   :  { %p2014_p0 = por %p2013_p13, %p2012_p12 }
  0x1f   :  { %p2015_p1 = pnand %p2014_p0, %p2008_p11 }
  0x21   :  { %2018 = shalt.err (!%p2015_p1)
}
  0x22   :  { %s2095_s2 = smov 1024   ;;  %s2096_s15 = smov 64  }
  0x23   :  { %27 = dma.hbm_to_vmem [thread:$0]  %s2464_s1, 16384, %s2131_s21, [#allocation3], %s2095_s2, %s2095_s2, %s2096_s15  }
  0x24   :  { %s2097_s18 = smov [#allocation7]   ;;  %s2098_s20 = smov [#allocation8]  }
  0x25   :  { %s44_s19 = sshll.u32 %s2097_s18, 4  ;;  %s54_s22 = sshll.u32 %s2098_s20, 4  ;;  %s45_s19 = int_to_ptr.vmem [resolvable:$true] %s44_s19  ;;  %s55_s22 = int_to_ptr.vmem [resolvable:$true] %s54_s22 }
  0x26   :  { %s2019_s25 = scalar_lea.hbm %s2466_s3, 256 }
  0x27   :  { %p2020_p2 = scmp.ne.s32.totalorder %s2466_s3, %s2019_s25  ;;  %p2023_p3 = scmp.lt.u32.totalorder %s2019_s25, %s2466_s3 }
  0x29   :  { %p2025_p4 = pnand %p2023_p3, %p2020_p2 }
  0x2b   :  { %2028 = shalt.err (!%p2025_p4)
}
  0x2c   :  { %s2029_s1 = scalar_lea.vmem %s45_s19, 256  ;;  %p2034_p6 = scmp.lt.s32.totalorder %s45_s19, %s45_s19 }
  0x2d   :  { %p2030_p5 = scmp.ne.s32.totalorder %s45_s19, %s2029_s1  ;;  %p2035_p7 = scmp.lt.s32.totalorder %s2029_s1, %s2029_s1 }
  0x2f   :  { %p2036_p8 = por %p2035_p7, %p2034_p6 }
  0x31   :  { %p2037_p9 = pnand %p2036_p8, %p2030_p5 }
  0x33   :  { %2040 = shalt.err (!%p2037_p9)
}
  0x34   :  { %47 = dma.hbm_to_vmem [thread:$0]  %s2466_s3, 256, %s45_s19, [#allocation6]  }
  0x35   :  { %s2041_s8 = scalar_lea.hbm %s2467_s4, 256 }
  0x36   :  { %p2042_p10 = scmp.ne.s32.totalorder %s2467_s4, %s2041_s8  ;;  %p2045_p11 = scmp.lt.u32.totalorder %s2041_s8, %s2467_s4 }
  0x38   :  { %p2047_p12 = pnand %p2045_p11, %p2042_p10 }
  0x3a   :  { %2050 = shalt.err (!%p2047_p12)
}
  0x3b   :  { %s2051_s13 = scalar_lea.vmem %s55_s22, 256  ;;  %p2056_p0 = scmp.lt.s32.totalorder %s55_s22, %s55_s22 }
  0x3c   :  { %p2052_p13 = scmp.ne.s32.totalorder %s55_s22, %s2051_s13  ;;  %p2057_p1 = scmp.lt.s32.totalorder %s2051_s13, %s2051_s13 }
  0x3e   :  { %p2058_p2 = por %p2057_p1, %p2056_p0 }
  0x40   :  { %p2059_p3 = pnand %p2058_p2, %p2052_p13 }
  0x42   :  { %2062 = shalt.err (!%p2059_p3)
}
  0x43   :  { %57 = dma.hbm_to_vmem [thread:$0]  %s2467_s4, 256, %s55_s22, [#allocation9]  }
  0x44   :  { %2085 = dma.done.wait [#allocation3], 16384  }
  0x45   :  { %2086 = vsyncadd [#allocation3], 4294950912 }
  0x46   :  { %2087 = dma.done.wait [#allocation6], 512  }
  0x47   :  { %2088 = vsyncadd [#allocation6], 4294966784 }
  0x48   :  { %2089 = dma.done.wait [#allocation9], 256  }
  0x49   :  { %2090 = vsyncadd [#allocation9], 4294967040  ;;  %v2099_v0 = vmov 0   ;;  %v73_v1 = vld [vmem:[#allocation2] sm:$0xff]  ;;  %v74_v3 = vld [vmem:[#allocation2 + $0x8] sm:$0xff] }
  0x4a   :  { %957 = vmatprep.mubr.bf16.mxu0 %v2099_v0  ;;  %998 = vmatprep.mubr.bf16.mxu1 %v2099_v0  ;;  %v81_v2 = vld [vmem:[#allocation2 + $0x40] sm:$0xff]  ;;  %v82_v5 = vld [vmem:[#allocation2 + $0x48] sm:$0xff]  ;;  %v75_v63 = vld [vmem:[#allocation2 + $0x10] sm:$0xff] }
  0x4b   :  { %v1808_v4 = vcombine.high %v73_v1, %v81_v2  ;;  %v1807_v6 = vcombine.low %v73_v1, %v81_v2  ;;  %v89_v7 = vld [vmem:[#allocation2 + $0x80] sm:$0xff]  ;;  %v1810_v9 = vcombine.high %v74_v3, %v82_v5  ;;  %v1809_v10 = vcombine.low %v74_v3, %v82_v5  ;;  %v90_v12 = vld [vmem:[#allocation2 + $0x88] sm:$0xff]  ;;  %v83_v1 = vld [vmem:[#allocation2 + $0x50] sm:$0xff] }
  0x4c   :  { %v97_v8 = vld [vmem:[#allocation2 + $0xc0] sm:$0xff]  ;;  %v98_v13 = vld [vmem:[#allocation2 + $0xc8] sm:$0xff]  ;;  %v76_v2 = vld [vmem:[#allocation2 + $0x18] sm:$0xff] }
  0x4d   :  { %v1824_v11 = vcombine.high %v89_v7, %v97_v8  ;;  %v105_v14 = vld [vmem:[#allocation2 + $0x100] sm:$0xff]  ;;  %925 = vmatprep.subr.bf16.mxu0 %v1808_v4  ;;  %v1826_v15 = vcombine.high %v90_v12, %v98_v13  ;;  %v106_v17 = vld [vmem:[#allocation2 + $0x108] sm:$0xff]  ;;  %966 = vmatprep.subr.bf16.mxu1 %v1810_v9  ;;  %v1823_v19 = vcombine.low %v89_v7, %v97_v8  ;;  %v84_v3 = vld [vmem:[#allocation2 + $0x58] sm:$0xff] }
  0x4e   :  { %v113_v16 = vld [vmem:[#allocation2 + $0x140] sm:$0xff]  ;;  %v114_v18 = vld [vmem:[#allocation2 + $0x148] sm:$0xff]  ;;  %926 = vmatpush1.bf16.msra.mxu0 %v1807_v6  ;;  %967 = vmatpush1.bf16.msra.mxu1 %v1809_v10  ;;  %v1825_v20 = vcombine.low %v90_v12, %v98_v13  ;;  %v1812_v7 = vcombine.high %v75_v63, %v83_v1  ;;  %v1814_v8 = vcombine.high %v76_v2, %v84_v3  ;;  %v91_v9 = vld [vmem:[#allocation2 + $0x90] sm:$0xff] }
  0x4f   :  { %927 = vmatprep.subr.bf16.mxu0 %v1824_v11  ;;  %v1840_v21 = vcombine.high %v105_v14, %v113_v16  ;;  %968 = vmatprep.subr.bf16.mxu1 %v1826_v15  ;;  %v1842_v22 = vcombine.high %v106_v17, %v114_v18  ;;  %v121_v23 = vld [vmem:[#allocation2 + $0x180] sm:$0xff]  ;;  %v122_v25 = vld [vmem:[#allocation2 + $0x188] sm:$0xff]  ;;  %v1839_v27 = vcombine.low %v105_v14, %v113_v16  ;;  %v99_v10 = vld [vmem:[#allocation2 + $0xd0] sm:$0xff] }
  0x50   :  { %v129_v24 = vld [vmem:[#allocation2 + $0x1c0] sm:$0xff]  ;;  %v130_v26 = vld [vmem:[#allocation2 + $0x1c8] sm:$0xff]  ;;  %v1841_v28 = vcombine.low %v106_v17, %v114_v18  ;;  %v92_v12 = vld [vmem:[#allocation2 + $0x98] sm:$0xff]  ;;  %v1811_v14 = vcombine.low %v75_v63, %v83_v1  ;;  %v1813_v15 = vcombine.low %v76_v2, %v84_v3  ;;  %v1828_v16 = vcombine.high %v91_v9, %v99_v10 }
  0x51   :  { %v1856_v29 = vcombine.high %v121_v23, %v129_v24  ;;  %v1858_v30 = vcombine.high %v122_v25, %v130_v26  ;;  %v137_v31 = vld [vmem:[#allocation2 + $0x200] sm:$0xff]  ;;  %v138_v33 = vld [vmem:[#allocation2 + $0x208] sm:$0xff]  ;;  %v1855_v35 = vcombine.low %v121_v23, %v129_v24  ;;  %v1857_v36 = vcombine.low %v122_v25, %v130_v26  ;;  %v100_v13 = vld [vmem:[#allocation2 + $0xd8] sm:$0xff] }
  0x52   :  { %928 = vmatpush1.bf16.msra.mxu0 %v1823_v19  ;;  %969 = vmatpush1.bf16.msra.mxu1 %v1825_v20  ;;  %v145_v32 = vld [vmem:[#allocation2 + $0x240] sm:$0xff]  ;;  %v146_v34 = vld [vmem:[#allocation2 + $0x248] sm:$0xff]  ;;  %v1830_v17 = vcombine.high %v92_v12, %v100_v13  ;;  %v107_v18 = vld [vmem:[#allocation2 + $0x110] sm:$0xff]  ;;  %v1829_v23 = vcombine.low %v92_v12, %v100_v13 }
  0x53   :  { %929 = vmatprep.subr.bf16.mxu0 %v1840_v21  ;;  %970 = vmatprep.subr.bf16.mxu1 %v1842_v22  ;;  %v1872_v37 = vcombine.high %v137_v31, %v145_v32  ;;  %v1874_v38 = vcombine.high %v138_v33, %v146_v34  ;;  %v153_v39 = vld [vmem:[#allocation2 + $0x280] sm:$0xff]  ;;  %v154_v41 = vld [vmem:[#allocation2 + $0x288] sm:$0xff]  ;;  %v1871_v43 = vcombine.low %v137_v31, %v145_v32  ;;  %v115_v19 = vld [vmem:[#allocation2 + $0x150] sm:$0xff] }
  0x54   :  { %v161_v40 = vld [vmem:[#allocation2 + $0x2c0] sm:$0xff]  ;;  %v162_v42 = vld [vmem:[#allocation2 + $0x2c8] sm:$0xff]  ;;  %v1873_v44 = vcombine.low %v138_v33, %v146_v34  ;;  %v108_v20 = vld [vmem:[#allocation2 + $0x118] sm:$0xff]  ;;  %v1827_v22 = vcombine.low %v91_v9, %v99_v10  ;;  %v1844_v24 = vcombine.high %v107_v18, %v115_v19 }
  0x55   :  { %v1888_v45 = vcombine.high %v153_v39, %v161_v40  ;;  %v1890_v46 = vcombine.high %v154_v41, %v162_v42  ;;  %v169_v47 = vld [vmem:[#allocation2 + $0x300] sm:$0xff]  ;;  %v170_v49 = vld [vmem:[#allocation2 + $0x308] sm:$0xff]  ;;  %v1887_v51 = vcombine.low %v153_v39, %v161_v40  ;;  %v1889_v52 = vcombine.low %v154_v41, %v162_v42  ;;  %v116_v21 = vld [vmem:[#allocation2 + $0x158] sm:$0xff] }
  0x56   :  { %930 = vmatpush1.bf16.msra.mxu0 %v1839_v27  ;;  %971 = vmatpush1.bf16.msra.mxu1 %v1841_v28  ;;  %v177_v48 = vld [vmem:[#allocation2 + $0x340] sm:$0xff]  ;;  %v178_v50 = vld [vmem:[#allocation2 + $0x348] sm:$0xff]  ;;  %v1846_v25 = vcombine.high %v108_v20, %v116_v21  ;;  %v123_v26 = vld [vmem:[#allocation2 + $0x190] sm:$0xff]  ;;  %v1845_v31 = vcombine.low %v108_v20, %v116_v21 }
  0x57   :  { %931 = vmatprep.subr.bf16.mxu0 %v1856_v29  ;;  %972 = vmatprep.subr.bf16.mxu1 %v1858_v30  ;;  %v1904_v53 = vcombine.high %v169_v47, %v177_v48  ;;  %v1906_v54 = vcombine.high %v170_v49, %v178_v50  ;;  %v185_v55 = vld [vmem:[#allocation2 + $0x380] sm:$0xff]  ;;  %v186_v57 = vld [vmem:[#allocation2 + $0x388] sm:$0xff]  ;;  %v1903_v59 = vcombine.low %v169_v47, %v177_v48  ;;  %v131_v27 = vld [vmem:[#allocation2 + $0x1d0] sm:$0xff] }
  0x58   :  { %v193_v56 = vld [vmem:[#allocation2 + $0x3c0] sm:$0xff]  ;;  %v194_v58 = vld [vmem:[#allocation2 + $0x3c8] sm:$0xff]  ;;  %v1905_v60 = vcombine.low %v170_v49, %v178_v50  ;;  %v124_v28 = vld [vmem:[#allocation2 + $0x198] sm:$0xff]  ;;  %v1843_v30 = vcombine.low %v107_v18, %v115_v19  ;;  %v1860_v32 = vcombine.high %v123_v26, %v131_v27 }
  0x59   :  { %v1920_v61 = vcombine.high %v185_v55, %v193_v56  ;;  %v1922_v62 = vcombine.high %v186_v57, %v194_v58  ;;  %v1919_v4 = vcombine.low %v185_v55, %v193_v56  ;;  %v71_v5 = vld [vmem:[%s2463_s0] sm:$0xff]  ;;  %v1921_v6 = vcombine.low %v186_v57, %v194_v58  ;;  %v132_v29 = vld [vmem:[#allocation2 + $0x1d8] sm:$0xff]  ;;  %v139_v34 = vld [vmem:[#allocation2 + $0x210] sm:$0xff]  ;;  %s2100_s0 = smov [#allocation10]  }
  0x5a   :  { %932 = vmatpush1.bf16.msra.mxu0 %v1855_v35  ;;  %973 = vmatpush1.bf16.msra.mxu1 %v1857_v36  ;;  %v2191_v11 = vpack.c.bf16 %v71_v5, %v71_v5  ;;  %v1862_v33 = vcombine.high %v124_v28, %v132_v29  ;;  %v147_v35 = vld [vmem:[#allocation2 + $0x250] sm:$0xff]  ;;  %v140_v36 = vld [vmem:[#allocation2 + $0x218] sm:$0xff]  ;;  %v1861_v39 = vcombine.low %v124_v28, %v132_v29  ;;  %v77_v3 = vld [vmem:[#allocation2 + $0x20] sm:$0xff]  ;;  %s1796_s15 = sshll.u32 %s2100_s0, 4  ;;  %s1797_s15 = int_to_ptr.vmem [resolvable:$true] %s1796_s15 }
  0x5b   :  { %933 = vmatprep.subr.bf16.mxu0 %v1872_v37  ;;  %974 = vmatprep.subr.bf16.mxu1 %v1874_v38  ;;  %v148_v37 = vld [vmem:[#allocation2 + $0x258] sm:$0xff]  ;;  %v1859_v38 = vcombine.low %v123_v26, %v131_v27  ;;  %v1876_v40 = vcombine.high %v139_v34, %v147_v35  ;;  %v155_v42 = vld [vmem:[#allocation2 + $0x290] sm:$0xff]  ;;  %v78_v5 = vld [vmem:[#allocation2 + $0x28] sm:$0xff]  ;;  %s2063_s16 = scalar_lea.vmem %s1797_s15, 2048  ;;  %p2068_p5 = scmp.lt.s32.totalorder %s1797_s15, %s1797_s15 }
  0x5c   :  { %v1878_v41 = vcombine.high %v140_v36, %v148_v37  ;;  %v1877_v47 = vcombine.low %v140_v36, %v148_v37  ;;  %v171_v50 = vld [vmem:[#allocation2 + $0x310] sm:$0xff]  ;;  %v93_v12 = vld [vmem:[#allocation2 + $0xa0] sm:$0xff]  ;;  %p2064_p4 = scmp.ne.s32.totalorder %s1797_s15, %s2063_s16  ;;  %p2069_p6 = scmp.lt.s32.totalorder %s2063_s16, %s2063_s16 }
  0x5d   :  { %v187_v58 = vld [vmem:[#allocation2 + $0x390] sm:$0xff]  ;;  %v101_v13 = vld [vmem:[#allocation2 + $0xe0] sm:$0xff] }
  0x5e   :  { %934 = vmatpush1.bf16.msra.mxu0 %v1871_v43  ;;  %975 = vmatpush1.bf16.msra.mxu1 %v1873_v44  ;;  %v163_v43 = vld [vmem:[#allocation2 + $0x2d0] sm:$0xff]  ;;  %v156_v44 = vld [vmem:[#allocation2 + $0x298] sm:$0xff]  ;;  %v1832_v18 = vcombine.high %v93_v12, %v101_v13  ;;  %v109_v20 = vld [vmem:[#allocation2 + $0x120] sm:$0xff]  ;;  %p2070_p7 = por %p2069_p6, %p2068_p5 }
  0x5f   :  { %935 = vmatprep.subr.bf16.mxu0 %v1888_v45  ;;  %976 = vmatprep.subr.bf16.mxu1 %v1890_v46  ;;  %v164_v45 = vld [vmem:[#allocation2 + $0x2d8] sm:$0xff]  ;;  %v1875_v46 = vcombine.low %v139_v34, %v147_v35  ;;  %v1892_v48 = vcombine.high %v155_v42, %v163_v43  ;;  %v117_v21 = vld [vmem:[#allocation2 + $0x160] sm:$0xff] }
  0x60   :  { %v1894_v49 = vcombine.high %v156_v44, %v164_v45  ;;  %v1893_v55 = vcombine.low %v156_v44, %v164_v45  ;;  %v1848_v26 = vcombine.high %v109_v20, %v117_v21  ;;  %v125_v28 = vld [vmem:[#allocation2 + $0x1a0] sm:$0xff]  ;;  %p2071_p8 = pnand %p2070_p7, %p2064_p4 }
  0x61   :  { %v133_v29 = vld [vmem:[#allocation2 + $0x1e0] sm:$0xff] }
  0x62   :  { %936 = vmatpush1.bf16.msra.mxu0 %v1887_v51  ;;  %977 = vmatpush1.bf16.msra.mxu1 %v1889_v52  ;;  %v179_v51 = vld [vmem:[#allocation2 + $0x350] sm:$0xff]  ;;  %v172_v52 = vld [vmem:[#allocation2 + $0x318] sm:$0xff]  ;;  %v1864_v34 = vcombine.high %v125_v28, %v133_v29  ;;  %v141_v36 = vld [vmem:[#allocation2 + $0x220] sm:$0xff] }
  0x63   :  { %937 = vmatprep.subr.bf16.mxu0 %v1904_v53  ;;  %978 = vmatprep.subr.bf16.mxu1 %v1906_v54  ;;  %v180_v53 = vld [vmem:[#allocation2 + $0x358] sm:$0xff]  ;;  %v1891_v54 = vcombine.low %v155_v42, %v163_v43  ;;  %v1908_v56 = vcombine.high %v171_v50, %v179_v51  ;;  %v149_v37 = vld [vmem:[#allocation2 + $0x260] sm:$0xff] }
  0x64   :  { %v1910_v57 = vcombine.high %v172_v52, %v180_v53  ;;  %v1909_v63 = vcombine.low %v172_v52, %v180_v53  ;;  %v1880_v42 = vcombine.high %v141_v36, %v149_v37  ;;  %v157_v44 = vld [vmem:[#allocation2 + $0x2a0] sm:$0xff] }
  0x65   :  { %v165_v45 = vld [vmem:[#allocation2 + $0x2e0] sm:$0xff] }
  0x66   :  { %938 = vmatpush1.bf16.msra.mxu0 %v1903_v59  ;;  %979 = vmatpush1.bf16.msra.mxu1 %v1905_v60  ;;  %v195_v59 = vld [vmem:[#allocation2 + $0x3d0] sm:$0xff]  ;;  %v188_v60 = vld [vmem:[#allocation2 + $0x398] sm:$0xff]  ;;  %v173_v52 = vld [vmem:[#allocation2 + $0x320] sm:$0xff] }
  0x67   :  { %939 = vmatprep.subr.bf16.mxu0 %v1920_v61  ;;  %980 = vmatprep.subr.bf16.mxu1 %v1922_v62  ;;  %v196_v61 = vld [vmem:[#allocation2 + $0x3d8] sm:$0xff]  ;;  %v1907_v62 = vcombine.low %v171_v50, %v179_v51  ;;  %v1924_v1 = vcombine.high %v187_v58, %v195_v59  ;;  %v1896_v50 = vcombine.high %v157_v44, %v165_v45  ;;  %v181_v53 = vld [vmem:[#allocation2 + $0x360] sm:$0xff] }
  0x68   :  { %v1926_v2 = vcombine.high %v188_v60, %v196_v61 }
  0x6a   :  { %940 = vmatpush1.bf16.msra.mxu0 %v1919_v4  ;;  %981 = vmatpush1.bf16.msra.mxu1 %v1921_v6  ;;  %v85_v4 = vld [vmem:[#allocation2 + $0x60] sm:$0xff]  ;;  %v86_v6 = vld [vmem:[#allocation2 + $0x68] sm:$0xff] }
  0x6b   :  { %1007 = vmatprep.subr.bf16.mxu0 %v1812_v7  ;;  %1048 = vmatprep.subr.bf16.mxu1 %v1814_v8  ;;  %v1923_v7 = vcombine.low %v187_v58, %v195_v59  ;;  %v1925_v8 = vcombine.low %v188_v60, %v196_v61  ;;  %v1816_v9 = vcombine.high %v77_v3, %v85_v4  ;;  %v189_v60 = vld [vmem:[#allocation2 + $0x3a0] sm:$0xff] }
  0x6c   :  { %v1818_v10 = vcombine.high %v78_v5, %v86_v6  ;;  %v1912_v58 = vcombine.high %v173_v52, %v181_v53  ;;  %v197_v61 = vld [vmem:[#allocation2 + $0x3e0] sm:$0xff] }
  0x6d   :  { %958 = vmatmul.mubr.bf16.vlgmr.msra.gmra.mrb[0].mxu0 %v2191_v11  ;;  %999 = vmatmul.mubr.bf16.vlgmr.msra.gmra.mrb[0].mxu1 %v2191_v11 }
  0x6e   :  { %1008 = vmatpush1.bf16.msra.mxu0 %v1811_v14  ;;  %1049 = vmatpush1.bf16.msra.mxu1 %v1813_v15  ;;  %v94_v14 = vld [vmem:[#allocation2 + $0xa8] sm:$0xff] }
  0x6f   :  { %1009 = vmatprep.subr.bf16.mxu0 %v1828_v16  ;;  %1050 = vmatprep.subr.bf16.mxu1 %v1830_v17  ;;  %v102_v15 = vld [vmem:[#allocation2 + $0xe8] sm:$0xff]  ;;  %v1815_v16 = vcombine.low %v77_v3, %v85_v4  ;;  %v1817_v17 = vcombine.low %v78_v5, %v86_v6  ;;  %v1928_v3 = vcombine.high %v189_v60, %v197_v61  ;;  %v79_v5 = vld [vmem:[#allocation2 + $0x30] sm:$0xff] }
  0x70   :  { %1039 = vmatprep.mubr.bf16.mxu0 %v2099_v0  ;;  %1080 = vmatprep.mubr.bf16.mxu1 %v2099_v0  ;;  %v1834_v19 = vcombine.high %v94_v14, %v102_v15  ;;  %v87_v6 = vld [vmem:[#allocation2 + $0x70] sm:$0xff] }
  0x72   :  { %1010 = vmatpush1.bf16.msra.mxu0 %v1827_v22  ;;  %1051 = vmatpush1.bf16.msra.mxu1 %v1829_v23  ;;  %v110_v22 = vld [vmem:[#allocation2 + $0x128] sm:$0xff] }
  0x73   :  { %1011 = vmatprep.subr.bf16.mxu0 %v1844_v24  ;;  %1052 = vmatprep.subr.bf16.mxu1 %v1846_v25  ;;  %v118_v23 = vld [vmem:[#allocation2 + $0x168] sm:$0xff]  ;;  %v1831_v24 = vcombine.low %v93_v12, %v101_v13  ;;  %v1833_v25 = vcombine.low %v94_v14, %v102_v15  ;;  %v1820_v12 = vcombine.high %v79_v5, %v87_v6  ;;  %v95_v14 = vld [vmem:[#allocation2 + $0xb0] sm:$0xff] }
  0x74   :  { %v1850_v27 = vcombine.high %v110_v22, %v118_v23  ;;  %v103_v15 = vld [vmem:[#allocation2 + $0xf0] sm:$0xff] }
  0x76   :  { %1012 = vmatpush1.bf16.msra.mxu0 %v1843_v30  ;;  %1053 = vmatpush1.bf16.msra.mxu1 %v1845_v31  ;;  %v126_v30 = vld [vmem:[#allocation2 + $0x1a8] sm:$0xff] }
  0x77   :  { %1013 = vmatprep.subr.bf16.mxu0 %v1860_v32  ;;  %1054 = vmatprep.subr.bf16.mxu1 %v1862_v33  ;;  %v134_v31 = vld [vmem:[#allocation2 + $0x1e8] sm:$0xff]  ;;  %v1847_v32 = vcombine.low %v109_v20, %v117_v21  ;;  %v1849_v33 = vcombine.low %v110_v22, %v118_v23  ;;  %v1836_v20 = vcombine.high %v95_v14, %v103_v15  ;;  %v111_v22 = vld [vmem:[#allocation2 + $0x130] sm:$0xff] }
  0x78   :  { %v1866_v35 = vcombine.high %v126_v30, %v134_v31  ;;  %v119_v23 = vld [vmem:[#allocation2 + $0x170] sm:$0xff] }
  0x7a   :  { %1014 = vmatpush1.bf16.msra.mxu0 %v1859_v38  ;;  %1055 = vmatpush1.bf16.msra.mxu1 %v1861_v39  ;;  %v142_v38 = vld [vmem:[#allocation2 + $0x228] sm:$0xff] }
  0x7b   :  { %1015 = vmatprep.subr.bf16.mxu0 %v1876_v40  ;;  %1056 = vmatprep.subr.bf16.mxu1 %v1878_v41  ;;  %v150_v39 = vld [vmem:[#allocation2 + $0x268] sm:$0xff]  ;;  %v1863_v40 = vcombine.low %v125_v28, %v133_v29  ;;  %v1865_v41 = vcombine.low %v126_v30, %v134_v31  ;;  %v1852_v28 = vcombine.high %v111_v22, %v119_v23  ;;  %v127_v30 = vld [vmem:[#allocation2 + $0x1b0] sm:$0xff] }
  0x7c   :  { %v1882_v43 = vcombine.high %v142_v38, %v150_v39  ;;  %v135_v31 = vld [vmem:[#allocation2 + $0x1f0] sm:$0xff] }
  0x7e   :  { %1016 = vmatpush1.bf16.msra.mxu0 %v1875_v46  ;;  %1057 = vmatpush1.bf16.msra.mxu1 %v1877_v47  ;;  %v158_v46 = vld [vmem:[#allocation2 + $0x2a8] sm:$0xff] }
  0x7f   :  { %1017 = vmatprep.subr.bf16.mxu0 %v1892_v48  ;;  %1058 = vmatprep.subr.bf16.mxu1 %v1894_v49  ;;  %v166_v47 = vld [vmem:[#allocation2 + $0x2e8] sm:$0xff]  ;;  %v1879_v48 = vcombine.low %v141_v36, %v149_v37  ;;  %v1881_v49 = vcombine.low %v142_v38, %v150_v39  ;;  %v1868_v36 = vcombine.high %v127_v30, %v135_v31  ;;  %v143_v38 = vld [vmem:[#allocation2 + $0x230] sm:$0xff] }
  0x80   :  { %v1898_v51 = vcombine.high %v158_v46, %v166_v47  ;;  %v151_v39 = vld [vmem:[#allocation2 + $0x270] sm:$0xff] }
  0x82   :  { %1018 = vmatpush1.bf16.msra.mxu0 %v1891_v54  ;;  %1059 = vmatpush1.bf16.msra.mxu1 %v1893_v55  ;;  %v174_v54 = vld [vmem:[#allocation2 + $0x328] sm:$0xff] }
  0x83   :  { %1019 = vmatprep.subr.bf16.mxu0 %v1908_v56  ;;  %1060 = vmatprep.subr.bf16.mxu1 %v1910_v57  ;;  %v182_v55 = vld [vmem:[#allocation2 + $0x368] sm:$0xff]  ;;  %v1895_v56 = vcombine.low %v157_v44, %v165_v45  ;;  %v1897_v57 = vcombine.low %v158_v46, %v166_v47  ;;  %v1884_v44 = vcombine.high %v143_v38, %v151_v39  ;;  %v159_v45 = vld [vmem:[#allocation2 + $0x2b0] sm:$0xff]  ;;  %v160_v47 = vld [vmem:[#allocation2 + $0x2b8] sm:$0xff] }
  0x84   :  { %v1914_v59 = vcombine.high %v174_v54, %v182_v55  ;;  %v167_v46 = vld [vmem:[#allocation2 + $0x2f0] sm:$0xff] }
  0x86   :  { %1020 = vmatpush1.bf16.msra.mxu0 %v1907_v62  ;;  %1061 = vmatpush1.bf16.msra.mxu1 %v1909_v63  ;;  %v190_v62 = vld [vmem:[#allocation2 + $0x3a8] sm:$0xff] }
  0x87   :  { %1021 = vmatprep.subr.bf16.mxu0 %v1924_v1  ;;  %1062 = vmatprep.subr.bf16.mxu1 %v1926_v2  ;;  %v198_v63 = vld [vmem:[#allocation2 + $0x3e8] sm:$0xff]  ;;  %v1911_v1 = vcombine.low %v173_v52, %v181_v53  ;;  %v1913_v2 = vcombine.low %v174_v54, %v182_v55  ;;  %v175_v53 = vld [vmem:[#allocation2 + $0x330] sm:$0xff]  ;;  %v176_v55 = vld [vmem:[#allocation2 + $0x338] sm:$0xff] }
  0x88   :  { %v1930_v4 = vcombine.high %v190_v62, %v198_v63  ;;  %v183_v54 = vld [vmem:[#allocation2 + $0x370] sm:$0xff] }
  0x8a   :  { %1022 = vmatpush1.bf16.msra.mxu0 %v1923_v7  ;;  %1063 = vmatpush1.bf16.msra.mxu1 %v1925_v8  ;;  %v80_v7 = vld [vmem:[#allocation2 + $0x38] sm:$0xff] }
  0x8b   :  { %1089 = vmatprep.subr.bf16.mxu0 %v1816_v9  ;;  %1130 = vmatprep.subr.bf16.mxu1 %v1818_v10  ;;  %v88_v8 = vld [vmem:[#allocation2 + $0x78] sm:$0xff]  ;;  %v1927_v9 = vcombine.low %v189_v60, %v197_v61  ;;  %v1929_v10 = vcombine.low %v190_v62, %v198_v63  ;;  %v191_v61 = vld [vmem:[#allocation2 + $0x3b0] sm:$0xff] }
  0x8c   :  { %v1822_v13 = vcombine.high %v80_v7, %v88_v8  ;;  %v199_v62 = vld [vmem:[#allocation2 + $0x3f0] sm:$0xff]  ;;  %v192_v63 = vld [vmem:[#allocation2 + $0x3b8] sm:$0xff] }
  0x8d   :  { %1040 = vmatmul.mubr.bf16.vlgmr.msra.gmra.mrb[4].mxu0 %v2191_v11  ;;  %1081 = vmatmul.mubr.bf16.vlgmr.msra.gmra.mrb[4].mxu1 %v2191_v11 }
  0x8e   :  { %1090 = vmatpush1.bf16.msra.mxu0 %v1815_v16  ;;  %1131 = vmatpush1.bf16.msra.mxu1 %v1817_v17  ;;  %v96_v16 = vld [vmem:[#allocation2 + $0xb8] sm:$0xff] }
  0x8f   :  { %1091 = vmatprep.subr.bf16.mxu0 %v1832_v18  ;;  %1132 = vmatprep.subr.bf16.mxu1 %v1834_v19  ;;  %v104_v17 = vld [vmem:[#allocation2 + $0xf8] sm:$0xff]  ;;  %v1819_v18 = vcombine.low %v79_v5, %v87_v6  ;;  %v1821_v19 = vcombine.low %v80_v7, %v88_v8  ;;  %v1931_v6 = vcombine.low %v191_v61, %v199_v62  ;;  %v205_v8 = vlaneseq }
  0x90   :  { %1121 = vmatprep.mubr.bf16.mxu0 %v2099_v0  ;;  %1162 = vmatprep.mubr.bf16.mxu1 %v2099_v0  ;;  %v1838_v21 = vcombine.high %v96_v16, %v104_v17 }
  0x92   :  { %1092 = vmatpush1.bf16.msra.mxu0 %v1831_v24  ;;  %1133 = vmatpush1.bf16.msra.mxu1 %v1833_v25  ;;  %v112_v24 = vld [vmem:[#allocation2 + $0x138] sm:$0xff] }
  0x93   :  { %1093 = vmatprep.subr.bf16.mxu0 %v1848_v26  ;;  %1134 = vmatprep.subr.bf16.mxu1 %v1850_v27  ;;  %v120_v25 = vld [vmem:[#allocation2 + $0x178] sm:$0xff]  ;;  %v1835_v26 = vcombine.low %v95_v14, %v103_v15  ;;  %v1837_v27 = vcombine.low %v96_v16, %v104_v17 }
  0x94   :  { %v1854_v29 = vcombine.high %v112_v24, %v120_v25 }
  0x96   :  { %1094 = vmatpush1.bf16.msra.mxu0 %v1847_v32  ;;  %1135 = vmatpush1.bf16.msra.mxu1 %v1849_v33  ;;  %v128_v32 = vld [vmem:[#allocation2 + $0x1b8] sm:$0xff] }
  0x97   :  { %1095 = vmatprep.subr.bf16.mxu0 %v1864_v34  ;;  %1136 = vmatprep.subr.bf16.mxu1 %v1866_v35  ;;  %v136_v33 = vld [vmem:[#allocation2 + $0x1f8] sm:$0xff]  ;;  %v1851_v34 = vcombine.low %v111_v22, %v119_v23  ;;  %v1853_v35 = vcombine.low %v112_v24, %v120_v25 }
  0x98   :  { %v1870_v37 = vcombine.high %v128_v32, %v136_v33 }
  0x9a   :  { %1096 = vmatpush1.bf16.msra.mxu0 %v1863_v40  ;;  %1137 = vmatpush1.bf16.msra.mxu1 %v1865_v41  ;;  %v144_v40 = vld [vmem:[#allocation2 + $0x238] sm:$0xff] }
  0x9b   :  { %1097 = vmatprep.subr.bf16.mxu0 %v1880_v42  ;;  %1138 = vmatprep.subr.bf16.mxu1 %v1882_v43  ;;  %v152_v41 = vld [vmem:[#allocation2 + $0x278] sm:$0xff]  ;;  %v1867_v42 = vcombine.low %v127_v30, %v135_v31  ;;  %v1869_v43 = vcombine.low %v128_v32, %v136_v33 }
  0x9e   :  { %1098 = vmatpush1.bf16.msra.mxu0 %v1879_v48  ;;  %1139 = vmatpush1.bf16.msra.mxu1 %v1881_v49  ;;  %v168_v48 = vld [vmem:[#allocation2 + $0x2f8] sm:$0xff]  ;;  %v1883_v49 = vcombine.low %v143_v38, %v151_v39 }
  0x9f   :  { %1099 = vmatprep.subr.bf16.mxu0 %v1896_v50  ;;  %1140 = vmatprep.subr.bf16.mxu1 %v1898_v51  ;;  %v1885_v50 = vcombine.low %v144_v40, %v152_v41  ;;  %v1900_v51 = vcombine.high %v159_v45, %v167_v46  ;;  %v1902_v52 = vcombine.high %v160_v47, %v168_v48 }
  0xa2   :  { %1100 = vmatpush1.bf16.msra.mxu0 %v1895_v56  ;;  %1141 = vmatpush1.bf16.msra.mxu1 %v1897_v57  ;;  %v184_v56 = vld [vmem:[#allocation2 + $0x378] sm:$0xff]  ;;  %v1899_v57 = vcombine.low %v159_v45, %v167_v46 }
  0xa3   :  { %1101 = vmatprep.subr.bf16.mxu0 %v1912_v58  ;;  %1142 = vmatprep.subr.bf16.mxu1 %v1914_v59  ;;  %v1901_v58 = vcombine.low %v160_v47, %v168_v48  ;;  %v1916_v59 = vcombine.high %v175_v53, %v183_v54  ;;  %v1918_v60 = vcombine.high %v176_v55, %v184_v56 }
  0xa6   :  { %1102 = vmatpush1.bf16.msra.mxu0 %v1911_v1  ;;  %1143 = vmatpush1.bf16.msra.mxu1 %v1913_v2  ;;  %v200_v1 = vld [vmem:[#allocation2 + $0x3f8] sm:$0xff]  ;;  %v1915_v2 = vcombine.low %v175_v53, %v183_v54 }
  0xa7   :  { %1103 = vmatprep.subr.bf16.mxu0 %v1928_v3  ;;  %1144 = vmatprep.subr.bf16.mxu1 %v1930_v4  ;;  %v1917_v3 = vcombine.low %v176_v55, %v184_v56  ;;  %v1932_v4 = vcombine.high %v191_v61, %v199_v62  ;;  %v1934_v5 = vcombine.high %v192_v63, %v200_v1 }
  0xa8   :  { %v1933_v7 = vcombine.low %v192_v63, %v200_v1 }
  0xaa   :  { %1104 = vmatpush1.bf16.msra.mxu0 %v1927_v9  ;;  %1145 = vmatpush1.bf16.msra.mxu1 %v1929_v10  ;;  %v2207_v9 = vshrl.u32 %v205_v8, 7 }
  0xab   :  { %1171 = vmatprep.subr.bf16.mxu0 %v1820_v12  ;;  %1212 = vmatprep.subr.bf16.mxu1 %v1822_v13  ;;  %v2212_v12 = vld [vmem:[#allocation5] sm:$0xff] }
  0xac   :  { %v2210_v10 = vsub.s32 0, %v2207_v9  ;;  %v2215_v13 = vsub.s32 2, %v2207_v9  ;;  %v2218_v14 = vsub.s32 1, %v2207_v9  ;;  %v2221_v15 = vsub.s32 3, %v2207_v9 }
  0xad   :  { %1122 = vmatmul.mubr.bf16.vlgmr.msra.gmra.mrb[8].mxu0 %v2191_v11  ;;  %1163 = vmatmul.mubr.bf16.vlgmr.msra.gmra.mrb[8].mxu1 %v2191_v11 }
  0xae   :  { %1172 = vmatpush1.bf16.msra.mxu0 %v1819_v18  ;;  %1213 = vmatpush1.bf16.msra.mxu1 %v1821_v19  ;;  %v216_v16 = vrot.slane %v2212_v12, %v2215_v13  ;;  %v212_v17 = vrot.slane %v2212_v12, %v2218_v14  ;;  %v220_v18 = vrot.slane %v2212_v12, %v2221_v15 }
  0xaf   :  { %1173 = vmatprep.subr.bf16.mxu0 %v1836_v20  ;;  %1214 = vmatprep.subr.bf16.mxu1 %v1838_v21 }
  0xb0   :  { %1203 = vmatprep.mubr.bf16.mxu0 %v2099_v0  ;;  %1244 = vmatprep.mubr.bf16.mxu1 %v2099_v0  ;;  %v1886_v0 = vcombine.high %v144_v40, %v152_v41 }
  0xb2   :  { %1174 = vmatpush1.bf16.msra.mxu0 %v1835_v26  ;;  %1215 = vmatpush1.bf16.msra.mxu1 %v1837_v27 }
  0xb3   :  { %1175 = vmatprep.subr.bf16.mxu0 %v1852_v28  ;;  %1216 = vmatprep.subr.bf16.mxu1 %v1854_v29 }
  0xb6   :  { %1176 = vmatpush1.bf16.msra.mxu0 %v1851_v34  ;;  %1217 = vmatpush1.bf16.msra.mxu1 %v1853_v35 }
  0xb7   :  { %1177 = vmatprep.subr.bf16.mxu0 %v1868_v36  ;;  %1218 = vmatprep.subr.bf16.mxu1 %v1870_v37 }
  0xba   :  { %1178 = vmatpush1.bf16.msra.mxu0 %v1867_v42  ;;  %1219 = vmatpush1.bf16.msra.mxu1 %v1869_v43 }
  0xbb   :  { %1179 = vmatprep.subr.bf16.mxu0 %v1884_v44  ;;  %1220 = vmatprep.subr.bf16.mxu1 %v1886_v0 }
  0xbe   :  { %1180 = vmatpush1.bf16.msra.mxu0 %v1883_v49  ;;  %1221 = vmatpush1.bf16.msra.mxu1 %v1885_v50 }
  0xbf   :  { %1181 = vmatprep.subr.bf16.mxu0 %v1900_v51  ;;  %1222 = vmatprep.subr.bf16.mxu1 %v1902_v52 }
  0xc2   :  { %1182 = vmatpush1.bf16.msra.mxu0 %v1899_v57  ;;  %1223 = vmatpush1.bf16.msra.mxu1 %v1901_v58 }
  0xc3   :  { %1183 = vmatprep.subr.bf16.mxu0 %v1916_v59  ;;  %1224 = vmatprep.subr.bf16.mxu1 %v1918_v60 }
  0xc6   :  { %1184 = vmatpush1.bf16.msra.mxu0 %v1915_v2  ;;  %1225 = vmatpush1.bf16.msra.mxu1 %v1917_v3 }
  0xc7   :  { %1185 = vmatprep.subr.bf16.mxu0 %v1932_v4  ;;  %1226 = vmatprep.subr.bf16.mxu1 %v1934_v5 }
  0xca   :  { %1186 = vmatpush1.bf16.msra.mxu0 %v1931_v6  ;;  %1227 = vmatpush1.bf16.msra.mxu1 %v1933_v7 }
  0xcd   :  { %1204 = vmatmul.mubr.bf16.vlgmr.msra.gmra.mrb[12].mxu0 %v2191_v11  ;;  %1245 = vmatmul.mubr.bf16.vlgmr.msra.gmra.mrb[12].mxu1 %v2191_v11  ;;  %v208_v11 = vrot.slane %v2212_v12, %v2210_v10 }
 0x140   :  { %v959_v19 = vpop.f32.mrb[0].mxu0  ;;  %v1000_v21 = vpop.f32.mrb[0].mxu1 }
 0x141   :  { %v960_v20 = vadd.f32 %v959_v19, %v208_v11  ;;  %v961_v22 = vpop.f32.mrb[1].mxu0  ;;  %v1001_v23 = vadd.f32 %v1000_v21, %v216_v16  ;;  %v1002_v25 = vpop.f32.mrb[1].mxu1  ;;  %v2251_v21 = vsub.s32 6, %v2207_v9 }
 0x142   :  { %v962_v24 = vadd.f32 %v961_v22, %v212_v17  ;;  %v963_v26 = vpop.f32.mrb[2].mxu0  ;;  %v1003_v28 = vadd.f32 %v1002_v25, %v220_v18  ;;  %v1004_v29 = vpop.f32.mrb[2].mxu1  ;;  %v2248_v18 = vsub.s32 4, %v2207_v9  ;;  %v2254_v22 = vsub.s32 5, %v2207_v9 }
 0x143   :  { %v1257_v27 = vrot.slane %v960_v20, 4  ;;  %v964_v30 = vpop.f32.mrb[3].mxu0  ;;  %v1269_v31 = vrot.slane %v1001_v23, 4  ;;  %v1005_v33 = vpop.f32.mrb[3].mxu1  ;;  %v2257_v25 = vsub.s32 7, %v2207_v9 }
 0x144   :  { %v1263_v32 = vrot.slane %v962_v24, 4  ;;  %v1275_v35 = vrot.slane %v1003_v28, 4  ;;  %v224_v30 = vrot.slane %v2212_v12, %v2248_v18  ;;  %v232_v33 = vrot.slane %v2212_v12, %v2251_v21 }
 0x145   :  { %v1258_v34 = vadd.f32 %v1257_v27, %v960_v20  ;;  %v1270_v36 = vadd.f32 %v1269_v31, %v1001_v23  ;;  %v236_v9 = vrot.slane %v2212_v12, %v2257_v25 }
 0x146   :  { %v1264_v37 = vadd.f32 %v1263_v32, %v962_v24  ;;  %v1276_v39 = vadd.f32 %v1275_v35, %v1003_v28 }
 0x147   :  { %v1259_v38 = vrot.slane %v1258_v34, 2  ;;  %v1271_v40 = vrot.slane %v1270_v36, 2 }
 0x148   :  { %v1265_v41 = vrot.slane %v1264_v37, 2  ;;  %v1277_v43 = vrot.slane %v1276_v39, 2 }
 0x149   :  { %v1260_v42 = vadd.f32 %v1259_v38, %v1258_v34  ;;  %v1272_v44 = vadd.f32 %v1271_v40, %v1270_v36  ;;  %v228_v34 = vrot.slane %v2212_v12, %v2254_v22 }
 0x14a   :  { %v1266_v0 = vadd.f32 %v1265_v41, %v1264_v37  ;;  %v1278_v46 = vadd.f32 %v1277_v43, %v1276_v39 }
 0x14b   :  { %v1261_v45 = vrot.slane %v1260_v42, 1  ;;  %v1273_v47 = vrot.slane %v1272_v44, 1 }
 0x14c   :  { %v1267_v48 = vrot.slane %v1266_v0, 1  ;;  %v1279_v50 = vrot.slane %v1278_v46, 1 }
 0x14d   :  { %v1262_v49 = vadd.f32 %v1261_v45, %v1260_v42  ;;  %v1274_v51 = vadd.f32 %v1273_v47, %v1272_v44 }
 0x14e   :  { %v1268_v52 = vadd.f32 %v1267_v48, %v1266_v0  ;;  %v1280_v54 = vadd.f32 %v1279_v50, %v1278_v46 }
 0x14f   :  { %v1354_v53 = vmul.f32 0.125, %v1262_v49  ;;  %v1356_v55 = vmul.f32 0.125, %v1274_v51 }
 0x150   :  { %v1355_v56 = vmul.f32 0.125, %v1268_v52  ;;  %v1357_v58 = vmul.f32 0.125, %v1280_v54 }
 0x151   :  { %v2231_v57 = vsub.f32 %v960_v20, %v1354_v53  ;;  %v2233_v59 = vsub.f32 %v1001_v23, %v1356_v55 }
 0x152   :  { %v2235_v60 = vsub.f32 %v962_v24, %v1355_v56  ;;  %v2239_v62 = vsub.f32 %v1003_v28, %v1357_v58 }
 0x153   :  { %v1386_v61 = vmul.f32 %v2231_v57, %v2231_v57  ;;  %v1388_v63 = vmul.f32 %v2233_v59, %v2233_v59 }
 0x154   :  { %v1387_v1 = vmul.f32 %v2235_v60, %v2235_v60  ;;  %v1389_v3 = vmul.f32 %v2239_v62, %v2239_v62 }
 0x155   :  { %v1402_v2 = vrot.slane %v1386_v61, 4  ;;  %v1414_v4 = vrot.slane %v1388_v63, 4 }
 0x156   :  { %v1408_v5 = vrot.slane %v1387_v1, 4  ;;  %v1420_v7 = vrot.slane %v1389_v3, 4 }
 0x157   :  { %v1403_v6 = vadd.f32 %v1402_v2, %v1386_v61  ;;  %v1415_v8 = vadd.f32 %v1414_v4, %v1388_v63 }
 0x158   :  { %v1409_v11 = vadd.f32 %v1408_v5, %v1387_v1  ;;  %v1421_v17 = vadd.f32 %v1420_v7, %v1389_v3 }
 0x159   :  { %v1404_v16 = vrot.slane %v1403_v6, 2  ;;  %v1416_v19 = vrot.slane %v1415_v8, 2 }
 0x15a   :  { %v1410_v20 = vrot.slane %v1409_v11, 2  ;;  %v1422_v24 = vrot.slane %v1421_v17, 2 }
 0x15b   :  { %v1405_v23 = vadd.f32 %v1404_v16, %v1403_v6  ;;  %v1417_v26 = vadd.f32 %v1416_v19, %v1415_v8  ;;  %v2279_v19 = vld [vmem:[#allocation7] sm:$0xff] }
 0x15c   :  { %v1411_v27 = vadd.f32 %v1410_v20, %v1409_v11  ;;  %v1423_v29 = vadd.f32 %v1422_v24, %v1421_v17  ;;  %v2281_v24 = vld [vmem:[#allocation8] sm:$0xff] }
 0x15d   :  { %v1406_v28 = vrot.slane %v1405_v23, 1  ;;  %v1418_v31 = vrot.slane %v1417_v26, 1 }
 0x15e   :  { %v1412_v32 = vrot.slane %v1411_v27, 1  ;;  %v1424_v36 = vrot.slane %v1423_v29, 1 }
 0x15f   :  { %v1407_v35 = vadd.f32 %v1406_v28, %v1405_v23  ;;  %v1419_v37 = vadd.f32 %v1418_v31, %v1417_v26  ;;  %v1575_v31 = vrot.slane %v2279_v19, %v2215_v13 }
 0x160   :  { %v1413_v38 = vadd.f32 %v1412_v32, %v1411_v27  ;;  %v1041_v39 = vpop.f32.mrb[4].mxu0  ;;  %v1425_v41 = vadd.f32 %v1424_v36, %v1423_v29  ;;  %v1082_v43 = vpop.f32.mrb[4].mxu1 }
 0x161   :  { %v1498_v40 = vmul.f32 0.125, %v1407_v35  ;;  %v2267_v42 = vadd.f32 %v1041_v39, %v224_v30  ;;  %v1043_v44 = vpop.f32.mrb[5].mxu0  ;;  %v1500_v0 = vmul.f32 0.125, %v1419_v37  ;;  %v2269_v46 = vadd.f32 %v1082_v43, %v232_v33  ;;  %v1084_v48 = vpop.f32.mrb[5].mxu1 }
 0x162   :  { %v1499_v45 = vmul.f32 0.125, %v1413_v38  ;;  %v2271_v47 = vadd.f32 %v1043_v44, %v228_v34  ;;  %v1045_v49 = vpop.f32.mrb[6].mxu0  ;;  %v1501_v51 = vmul.f32 0.125, %v1425_v41  ;;  %v1085_v52 = vadd.f32 %v1084_v48, %v236_v9  ;;  %v1086_v53 = vpop.f32.mrb[6].mxu1 }
 0x163   :  { %v1514_v50 = vadd.f32 1e-05, %v1498_v40  ;;  %v1281_v12 = vrot.slane %v2267_v42, 4  ;;  %v1046_v54 = vpop.f32.mrb[7].mxu0  ;;  %v1516_v55 = vadd.f32 1e-05, %v1500_v0  ;;  %v1567_v30 = vrot.slane %v2279_v19, %v2210_v10 }
 0x164   :  { %v1515_v56 = vadd.f32 1e-05, %v1499_v45  ;;  %v1293_v58 = vrot.slane %v2269_v46, 4  ;;  %v1287_v61 = vrot.slane %v2271_v47, 4  ;;  %v1517_v63 = vadd.f32 1e-05, %v1501_v51 }
 0x165   :  { %1943 = vrsqrt.f32 %v1514_v50  ;;  %v1282_v1 = vadd.f32 %v1281_v12, %v2267_v42  ;;  %v1299_v2 = vrot.slane %v1085_v52, 4  ;;  %v1087_v3 = vpop.f32.mrb[7].mxu1  ;;  %v1665_v34 = vrot.slane %v2281_v24, %v2210_v10 }
 0x166   :  { %1945 = vrsqrt.f32 %v1516_v55  ;;  %v1294_v4 = vadd.f32 %v1293_v58, %v2269_v46  ;;  %v1288_v5 = vadd.f32 %v1287_v61, %v2271_v47  ;;  %v1571_v35 = vrot.slane %v2279_v19, %v2218_v14 }
 0x167   :  { %1947 = vrsqrt.f32 %v1515_v56  ;;  %v1283_v6 = vrot.slane %v1282_v1, 2  ;;  %v1300_v7 = vadd.f32 %v1299_v2, %v1085_v52  ;;  %v1673_v38 = vrot.slane %v2281_v24, %v2215_v13 }
 0x168   :  { %1949 = vrsqrt.f32 %v1517_v63  ;;  %v1295_v8 = vrot.slane %v1294_v4, 2  ;;  %v1289_v11 = vrot.slane %v1288_v5, 2  ;;  %v1579_v39 = vrot.slane %v2279_v19, %v2221_v15 }
 0x169   :  { %v1284_v16 = vadd.f32 %v1283_v6, %v1282_v1  ;;  %v1301_v17 = vrot.slane %v1300_v7, 2  ;;  %v1669_v0 = vrot.slane %v2281_v24, %v2218_v14  ;;  %v1677_v51 = vrot.slane %v2281_v24, %v2221_v15 }
 0x16a   :  { %v1296_v20 = vadd.f32 %v1295_v8, %v1294_v4  ;;  %v1290_v23 = vadd.f32 %v1289_v11, %v1288_v5 }
 0x16b   :  { %v1285_v26 = vrot.slane %v1284_v16, 1  ;;  %v1302_v27 = vadd.f32 %v1301_v17, %v1300_v7 }
 0x16c   :  { %v1297_v28 = vrot.slane %v1296_v20, 1  ;;  %v1291_v29 = vrot.slane %v1290_v23, 1 }
 0x16d   :  { %v1286_v32 = vadd.f32 %v1285_v26, %v1284_v16  ;;  %v1303_v33 = vrot.slane %v1302_v27, 1 }
 0x16e   :  { %v1298_v36 = vadd.f32 %v1297_v28, %v1296_v20  ;;  %v1292_v9 = vadd.f32 %v1291_v29, %v1290_v23 }
 0x16f   :  { %v1944_v37 = vpop.eup %1943  ;;  %v1358_v40 = vmul.f32 0.125, %v1286_v32  ;;  %v1304_v41 = vadd.f32 %v1303_v33, %v1302_v27  ;;  %v2322_v32 = vld [vmem:[#allocation5 + $0x8] sm:$0xff] }
 0x170   :  { %v1946_v43 = vpop.eup %1945  ;;  %v1546_v44 = vmul.f32 %v1944_v37, %v2231_v57  ;;  %v1360_v45 = vmul.f32 0.125, %v1298_v36  ;;  %v1359_v48 = vmul.f32 0.125, %v1292_v9 }
 0x171   :  { %v1948_v49 = vpop.eup %1947  ;;  %v1548_v50 = vmul.f32 %v1946_v43, %v2233_v59  ;;  %v2302_v12 = vsub.f32 %v2267_v42, %v1358_v40  ;;  %v1361_v53 = vmul.f32 0.125, %v1304_v41  ;;  %v248_v41 = vrot.slane %v2322_v32, %v2215_v13 }
 0x172   :  { %v1950_v54 = vpop.eup %1949  ;;  %v1644_v55 = vmul.f32 %v1567_v30, %v1546_v44  ;;  %v1547_v56 = vmul.f32 %v1948_v49, %v2235_v60  ;;  %v2306_v57 = vsub.f32 %v2269_v46, %v1360_v45  ;;  %v2309_v58 = vsub.f32 %v2271_v47, %v1359_v48 }
 0x173   :  { %v1646_v61 = vmul.f32 %v1575_v31, %v1548_v50  ;;  %v1549_v59 = vmul.f32 %v1950_v54, %v2239_v62  ;;  %v1390_v63 = vmul.f32 %v2302_v12, %v2302_v12  ;;  %v2314_v1 = vsub.f32 %v1085_v52, %v1361_v53 }
 0x174   :  { %v1742_v42 = vadd.f32 %v1665_v34, %v1644_v55  ;;  %v1645_v2 = vmul.f32 %v1571_v35, %v1547_v56  ;;  %v1392_v3 = vmul.f32 %v2306_v57, %v2306_v57  ;;  %v1391_v60 = vmul.f32 %v2309_v58, %v2309_v58 }
 0x175   :  { %v1744_v46 = vadd.f32 %v1673_v38, %v1646_v61  ;;  %v1647_v4 = vmul.f32 %v1579_v39, %v1549_v59  ;;  %v1426_v47 = vrot.slane %v1390_v63, 4  ;;  %v1393_v5 = vmul.f32 %v2314_v1, %v2314_v1 }
 0x176   :  { %v1758_v62 = vmax.f32 %v1742_v42, 0.0  ;;  %v1743_v6 = vadd.f32 %v1669_v0, %v1645_v2  ;;  %v1438_v7 = vrot.slane %v1392_v3, 4  ;;  %v1432_v8 = vrot.slane %v1391_v60, 4 }
 0x177   :  { %v1760_v52 = vmax.f32 %v1744_v46, 0.0  ;;  %v1745_v11 = vadd.f32 %v1677_v51, %v1647_v4  ;;  %v1427_v16 = vadd.f32 %v1426_v47, %v1390_v63  ;;  %v1444_v17 = vrot.slane %v1393_v5, 4 }
 0x178   :  { %1774 = vst [vmem:[#allocation10] sm:$0xff] %v1758_v62  ;;  %v1759_v20 = vmax.f32 %v1743_v6, 0.0  ;;  %v1439_v23 = vadd.f32 %v1438_v7, %v1392_v3  ;;  %v1433_v26 = vadd.f32 %v1432_v8, %v1391_v60  ;;  %v240_v38 = vrot.slane %v2322_v32, %v2210_v10 }
 0x179   :  { %1776 = vst [vmem:[#allocation10 + $0x10] sm:$0xff] %v1760_v52  ;;  %v1761_v27 = vmax.f32 %v1745_v11, 0.0  ;;  %v1428_v28 = vrot.slane %v1427_v16, 2  ;;  %v1445_v29 = vadd.f32 %v1444_v17, %v1393_v5  ;;  %v244_v43 = vrot.slane %v2322_v32, %v2218_v14 }
 0x17a   :  { %1775 = vst [vmem:[#allocation10 + $0x8] sm:$0xff] %v1759_v20  ;;  %v1440_v30 = vrot.slane %v1439_v23, 2  ;;  %v1434_v31 = vrot.slane %v1433_v26, 2  ;;  %v252_v45 = vrot.slane %v2322_v32, %v2221_v15 }
 0x17b   :  { %1777 = vst [vmem:[#allocation10 + $0x18] sm:$0xff] %v1761_v27  ;;  %v1429_v33 = vadd.f32 %v1428_v28, %v1427_v16  ;;  %v1446_v34 = vrot.slane %v1445_v29, 2 }
 0x17c   :  { %v1441_v35 = vadd.f32 %v1440_v30, %v1439_v23  ;;  %v1435_v36 = vadd.f32 %v1434_v31, %v1433_v26 }
 0x17d   :  { %v1430_v9 = vrot.slane %v1429_v33, 1  ;;  %v1447_v37 = vadd.f32 %v1446_v34, %v1445_v29 }
 0x17e   :  { %v1442_v39 = vrot.slane %v1441_v35, 1  ;;  %v1436_v40 = vrot.slane %v1435_v36, 1 }
 0x17f   :  { %v1431_v44 = vadd.f32 %v1430_v9, %v1429_v33  ;;  %v1448_v0 = vrot.slane %v1447_v37, 1 }
 0x180   :  { %v1443_v48 = vadd.f32 %v1442_v39, %v1441_v35  ;;  %v1437_v49 = vadd.f32 %v1436_v40, %v1435_v36  ;;  %v1123_v50 = vpop.f32.mrb[8].mxu0  ;;  %v1164_v55 = vpop.f32.mrb[8].mxu1  ;;  %v1583_v39 = vrot.slane %v2279_v19, %v2248_v18  ;;  %v1681_v40 = vrot.slane %v2281_v24, %v2248_v18 }
 0x181   :  { %v1502_v51 = vmul.f32 0.125, %v1431_v44  ;;  %v1449_v53 = vadd.f32 %v1448_v0, %v1447_v37  ;;  %v1124_v54 = vadd.f32 %v1123_v50, %v240_v38  ;;  %v1125_v56 = vpop.f32.mrb[9].mxu0  ;;  %v1165_v63 = vadd.f32 %v1164_v55, %v248_v41  ;;  %v1166_v2 = vpop.f32.mrb[9].mxu1 }
 0x182   :  { %v1504_v61 = vmul.f32 0.125, %v1443_v48  ;;  %v1503_v59 = vmul.f32 0.125, %v1437_v49  ;;  %v1126_v42 = vadd.f32 %v1125_v56, %v244_v43  ;;  %v1127_v3 = vpop.f32.mrb[10].mxu0  ;;  %v1167_v47 = vadd.f32 %v1166_v2, %v252_v45  ;;  %v1168_v5 = vpop.f32.mrb[10].mxu1 }
 0x183   :  { %v1518_v60 = vadd.f32 1e-05, %v1502_v51  ;;  %v1505_v46 = vmul.f32 0.125, %v1449_v53  ;;  %v1305_v4 = vrot.slane %v1124_v54, 4  ;;  %v1128_v62 = vpop.f32.mrb[11].mxu0  ;;  %v1317_v8 = vrot.slane %v1165_v63, 4 }
 0x184   :  { %v1520_v6 = vadd.f32 1e-05, %v1504_v61  ;;  %v1519_v7 = vadd.f32 1e-05, %v1503_v59  ;;  %v1311_v52 = vrot.slane %v1126_v42, 4  ;;  %v1323_v17 = vrot.slane %v1167_v47, 4 }
 0x185   :  { %1951 = vrsqrt.f32 %v1518_v60  ;;  %v1521_v11 = vadd.f32 1e-05, %v1505_v46  ;;  %v1306_v16 = vadd.f32 %v1305_v4, %v1124_v54  ;;  %v1169_v20 = vpop.f32.mrb[11].mxu1  ;;  %v1318_v23 = vadd.f32 %v1317_v8, %v1165_v63 }
 0x186   :  { %1953 = vrsqrt.f32 %v1520_v6  ;;  %v1312_v26 = vadd.f32 %v1311_v52, %v1126_v42  ;;  %v1324_v28 = vadd.f32 %v1323_v17, %v1167_v47  ;;  %v1591_v44 = vrot.slane %v2279_v19, %v2251_v21 }
 0x187   :  { %1955 = vrsqrt.f32 %v1519_v7  ;;  %v1307_v27 = vrot.slane %v1306_v16, 2  ;;  %v1319_v29 = vrot.slane %v1318_v23, 2  ;;  %v1587_v0 = vrot.slane %v2279_v19, %v2254_v22 }
 0x188   :  { %1957 = vrsqrt.f32 %v1521_v11  ;;  %v1313_v30 = vrot.slane %v1312_v26, 2  ;;  %v1325_v33 = vrot.slane %v1324_v28, 2  ;;  %v1689_v50 = vrot.slane %v2281_v24, %v2251_v21 }
 0x189   :  { %v1308_v31 = vadd.f32 %v1307_v27, %v1306_v16  ;;  %v1320_v34 = vadd.f32 %v1319_v29, %v1318_v23  ;;  %v1595_v51 = vrot.slane %v2279_v19, %v2257_v25  ;;  %v1685_v59 = vrot.slane %v2281_v24, %v2254_v22 }
 0x18a   :  { %v1314_v35 = vadd.f32 %v1313_v30, %v1312_v26  ;;  %v1326_v9 = vadd.f32 %v1325_v33, %v1324_v28  ;;  %v1693_v4 = vrot.slane %v2281_v24, %v2257_v25 }
 0x18b   :  { %v1309_v36 = vrot.slane %v1308_v31, 1  ;;  %v1321_v37 = vrot.slane %v1320_v34, 1 }
 0x18c   :  { %v1315_v38 = vrot.slane %v1314_v35, 1  ;;  %v1327_v43 = vrot.slane %v1326_v9, 1 }
 0x18d   :  { %v1310_v41 = vadd.f32 %v1309_v36, %v1308_v31  ;;  %v1322_v45 = vadd.f32 %v1321_v37, %v1320_v34 }
 0x18e   :  { %v1316_v48 = vadd.f32 %v1315_v38, %v1314_v35  ;;  %v1328_v55 = vadd.f32 %v1327_v43, %v1326_v9 }
 0x18f   :  { %v1952_v49 = vpop.eup %1951  ;;  %v1362_v53 = vmul.f32 0.125, %v1310_v41  ;;  %v1364_v2 = vmul.f32 0.125, %v1322_v45 }
 0x190   :  { %v1954_v56 = vpop.eup %1953  ;;  %v1550_v61 = vmul.f32 %v1952_v49, %v2302_v12  ;;  %v1363_v3 = vmul.f32 0.125, %v1316_v48  ;;  %v1365_v62 = vmul.f32 0.125, %v1328_v55  ;;  %v256_v48 = vrot.slane %v2322_v32, %v2248_v18 }
 0x191   :  { %v1956_v60 = vpop.eup %1955  ;;  %v1552_v46 = vmul.f32 %v1954_v56, %v2306_v57  ;;  %v2350_v5 = vsub.f32 %v1124_v54, %v1362_v53  ;;  %v2353_v8 = vsub.f32 %v1165_v63, %v1364_v2  ;;  %v260_v53 = vrot.slane %v2322_v32, %v2254_v22 }
 0x192   :  { %v1958_v19 = vpop.eup %1957  ;;  %v1648_v6 = vmul.f32 %v1583_v39, %v1550_v61  ;;  %v1551_v7 = vmul.f32 %v1956_v60, %v2309_v58  ;;  %v2355_v12 = vsub.f32 %v1126_v42, %v1363_v3  ;;  %v2360_v16 = vsub.f32 %v1167_v47, %v1365_v62 }
 0x193   :  { %v1650_v52 = vmul.f32 %v1591_v44, %v1552_v46  ;;  %v1553_v11 = vmul.f32 %v1958_v19, %v2314_v1  ;;  %v1394_v57 = vmul.f32 %v2350_v5, %v2350_v5  ;;  %v1396_v17 = vmul.f32 %v2353_v8, %v2353_v8 }
 0x194   :  { %v1746_v24 = vadd.f32 %v1681_v40, %v1648_v6  ;;  %v1649_v54 = vmul.f32 %v1587_v0, %v1551_v7  ;;  %v1395_v58 = vmul.f32 %v2355_v12, %v2355_v12  ;;  %v1397_v23 = vmul.f32 %v2360_v16, %v2360_v16 }
 0x195   :  { %v1748_v63 = vadd.f32 %v1689_v50, %v1650_v52  ;;  %v1651_v20 = vmul.f32 %v1595_v51, %v1553_v11  ;;  %v1450_v42 = vrot.slane %v1394_v57, 4  ;;  %v1462_v27 = vrot.slane %v1396_v17, 4 }
 0x196   :  { %v1762_v1 = vmax.f32 %v1746_v24, 0.0  ;;  %v1747_v26 = vadd.f32 %v1685_v59, %v1649_v54  ;;  %v1456_v28 = vrot.slane %v1395_v58, 4  ;;  %v1468_v31 = vrot.slane %v1397_v23, 4 }
 0x197   :  { %v1764_v47 = vmax.f32 %v1748_v63, 0.0  ;;  %v1749_v29 = vadd.f32 %v1693_v4, %v1651_v20  ;;  %v1451_v30 = vadd.f32 %v1450_v42, %v1394_v57  ;;  %v1463_v34 = vadd.f32 %v1462_v27, %v1396_v17 }
 0x198   :  { %1778 = vst [vmem:[#allocation10 + $0x20] sm:$0xff] %v1762_v1  ;;  %v1763_v33 = vmax.f32 %v1747_v26, 0.0  ;;  %v1457_v35 = vadd.f32 %v1456_v28, %v1395_v58  ;;  %v1469_v37 = vadd.f32 %v1468_v31, %v1397_v23  ;;  %v264_v51 = vrot.slane %v2322_v32, %v2251_v21 }
 0x199   :  { %1780 = vst [vmem:[#allocation10 + $0x30] sm:$0xff] %v1764_v47  ;;  %v1765_v36 = vmax.f32 %v1749_v29, 0.0  ;;  %v1452_v9 = vrot.slane %v1451_v30, 2  ;;  %v1464_v38 = vrot.slane %v1463_v34, 2  ;;  %v268_v61 = vrot.slane %v2322_v32, %v2257_v25 }
 0x19a   :  { %1779 = vst [vmem:[#allocation10 + $0x28] sm:$0xff] %v1763_v33  ;;  %v1458_v39 = vrot.slane %v1457_v35, 2  ;;  %v1470_v41 = vrot.slane %v1469_v37, 2 }
 0x19b   :  { %1781 = vst [vmem:[#allocation10 + $0x38] sm:$0xff] %v1765_v36  ;;  %v1453_v40 = vadd.f32 %v1452_v9, %v1451_v30  ;;  %v1465_v43 = vadd.f32 %v1464_v38, %v1463_v34  ;;  %v2388_v38 = vld [vmem:[#allocation7 + $0x8] sm:$0xff] }
 0x19c   :  { %v1459_v44 = vadd.f32 %v1458_v39, %v1457_v35  ;;  %v1471_v45 = vadd.f32 %v1470_v41, %v1469_v37  ;;  %v2390_v39 = vld [vmem:[#allocation8 + $0x8] sm:$0xff] }
 0x19d   :  { %v1454_v0 = vrot.slane %v1453_v40, 1  ;;  %v1466_v49 = vrot.slane %v1465_v43, 1 }
 0x19e   :  { %v1460_v50 = vrot.slane %v1459_v44, 1  ;;  %v1472_v56 = vrot.slane %v1471_v45, 1 }
 0x19f   :  { %v1455_v55 = vadd.f32 %v1454_v0, %v1453_v40  ;;  %v1467_v59 = vadd.f32 %v1466_v49, %v1465_v43  ;;  %v1697_v49 = vrot.slane %v2390_v39, %v2210_v10 }
 0x1a0   :  { %v1461_v2 = vadd.f32 %v1460_v50, %v1459_v44  ;;  %v1205_v3 = vpop.f32.mrb[12].mxu0  ;;  %v1473_v46 = vadd.f32 %v1472_v56, %v1471_v45  ;;  %v1246_v62 = vpop.f32.mrb[12].mxu1 }
 0x1a1   :  { %v1506_v60 = vmul.f32 0.125, %v1455_v55  ;;  %v2376_v4 = vadd.f32 %v1205_v3, %v256_v48  ;;  %v1207_v19 = vpop.f32.mrb[13].mxu0  ;;  %v1508_v6 = vmul.f32 0.125, %v1467_v59  ;;  %v2378_v52 = vadd.f32 %v1246_v62, %v264_v51  ;;  %v1248_v57 = vpop.f32.mrb[13].mxu1 }
 0x1a2   :  { %v1507_v7 = vmul.f32 0.125, %v1461_v2  ;;  %v2380_v11 = vadd.f32 %v1207_v19, %v260_v53  ;;  %v1209_v24 = vpop.f32.mrb[14].mxu0  ;;  %v1509_v17 = vmul.f32 0.125, %v1473_v46  ;;  %v1249_v58 = vadd.f32 %v1248_v57, %v268_v61  ;;  %v1250_v63 = vpop.f32.mrb[14].mxu1 }
 0x1a3   :  { %v1522_v54 = vadd.f32 1e-05, %v1506_v60  ;;  %v1329_v32 = vrot.slane %v2376_v4, 4  ;;  %v1210_v20 = vpop.f32.mrb[15].mxu0  ;;  %v1524_v42 = vadd.f32 1e-05, %v1508_v6  ;;  %v1599_v48 = vrot.slane %v2388_v38, %v2210_v10 }
 0x1a4   :  { %v1523_v23 = vadd.f32 1e-05, %v1507_v7  ;;  %v1341_v1 = vrot.slane %v2378_v52, 4  ;;  %v1335_v26 = vrot.slane %v2380_v11, 4  ;;  %v1525_v27 = vadd.f32 1e-05, %v1509_v17 }
 0x1a5   :  { %1959 = vrsqrt.f32 %v1522_v54  ;;  %v1330_v28 = vadd.f32 %v1329_v32, %v2376_v4  ;;  %v1347_v47 = vrot.slane %v1249_v58, 4  ;;  %v1251_v29 = vpop.f32.mrb[15].mxu1  ;;  %v1607_v53 = vrot.slane %v2388_v38, %v2215_v13 }
 0x1a6   :  { %1961 = vrsqrt.f32 %v1524_v42  ;;  %v1342_v30 = vadd.f32 %v1341_v1, %v2378_v52  ;;  %v1336_v31 = vadd.f32 %v1335_v26, %v2380_v11  ;;  %v1603_v55 = vrot.slane %v2388_v38, %v2218_v14 }
 0x1a7   :  { %1963 = vrsqrt.f32 %v1523_v23  ;;  %v1331_v33 = vrot.slane %v1330_v28, 2  ;;  %v1348_v34 = vadd.f32 %v1347_v47, %v1249_v58  ;;  %v1705_v2 = vrot.slane %v2390_v39, %v2215_v13 }
 0x1a8   :  { %1965 = vrsqrt.f32 %v1525_v27  ;;  %v1343_v35 = vrot.slane %v1342_v30, 2  ;;  %v1337_v36 = vrot.slane %v1336_v31, 2  ;;  %v1611_v3 = vrot.slane %v2388_v38, %v2221_v15 }
 0x1a9   :  { %v1332_v9 = vadd.f32 %v1331_v33, %v1330_v28  ;;  %v1349_v37 = vrot.slane %v1348_v34, 2  ;;  %v1701_v19 = vrot.slane %v2390_v39, %v2218_v14  ;;  %v1709_v54 = vrot.slane %v2390_v39, %v2221_v15 }
 0x1aa   :  { %v1344_v40 = vadd.f32 %v1343_v35, %v1342_v30  ;;  %v1338_v41 = vadd.f32 %v1337_v36, %v1336_v31 }
 0x1ab   :  { %v1333_v43 = vrot.slane %v1332_v9, 1  ;;  %v1350_v44 = vadd.f32 %v1349_v37, %v1348_v34 }
 0x1ac   :  { %v1345_v0 = vrot.slane %v1344_v40, 1  ;;  %v1339_v45 = vrot.slane %v1338_v41, 1 }
 0x1ad   :  { %v1334_v50 = vadd.f32 %v1333_v43, %v1332_v9  ;;  %v1351_v51 = vrot.slane %v1350_v44, 1 }
 0x1ae   :  { %v1346_v56 = vadd.f32 %v1345_v0, %v1344_v40  ;;  %v1340_v61 = vadd.f32 %v1339_v45, %v1338_v41 }
 0x1af   :  { %v1960_v59 = vpop.eup %1959  ;;  %v1366_v60 = vmul.f32 0.125, %v1334_v50  ;;  %v1352_v46 = vadd.f32 %v1351_v51, %v1350_v44 }
 0x1b0   :  { %v1962_v10 = vpop.eup %1961  ;;  %v1554_v62 = vmul.f32 %v1960_v59, %v2350_v5  ;;  %v1368_v6 = vmul.f32 0.125, %v1346_v56  ;;  %v1367_v7 = vmul.f32 0.125, %v1340_v61 }
 0x1b1   :  { %v1964_v57 = vpop.eup %1963  ;;  %v1556_v24 = vmul.f32 %v1962_v10, %v2353_v8  ;;  %v2411_v13 = vsub.f32 %v2376_v4, %v1366_v60  ;;  %v1369_v17 = vmul.f32 0.125, %v1352_v46 }
 0x1b2   :  { %v1966_v32 = vpop.eup %1965  ;;  %v1652_v63 = vmul.f32 %v1599_v48, %v1554_v62  ;;  %v1555_v20 = vmul.f32 %v1964_v57, %v2355_v12  ;;  %v2415_v5 = vsub.f32 %v2378_v52, %v1368_v6  ;;  %v2418_v14 = vsub.f32 %v2380_v11, %v1367_v7 }
 0x1b3   :  { %v1654_v42 = vmul.f32 %v1607_v53, %v1556_v24  ;;  %v1557_v8 = vmul.f32 %v1966_v32, %v2360_v16  ;;  %v1398_v15 = vmul.f32 %v2411_v13, %v2411_v13  ;;  %v2423_v23 = vsub.f32 %v1249_v58, %v1369_v17 }
 0x1b4   :  { %v1750_v4 = vadd.f32 %v1697_v49, %v1652_v63  ;;  %v1653_v1 = vmul.f32 %v1603_v55, %v1555_v20  ;;  %v1400_v26 = vmul.f32 %v2415_v5, %v2415_v5  ;;  %v1399_v12 = vmul.f32 %v2418_v14, %v2418_v14 }
 0x1b5   :  { %v1752_v52 = vadd.f32 %v1705_v2, %v1654_v42  ;;  %v1655_v27 = vmul.f32 %v1611_v3, %v1557_v8  ;;  %v1474_v11 = vrot.slane %v1398_v15, 4  ;;  %v1401_v28 = vmul.f32 %v2423_v23, %v2423_v23 }
 0x1b6   :  { %v1766_v16 = vmax.f32 %v1750_v4, 0.0  ;;  %v1751_v47 = vadd.f32 %v1701_v19, %v1653_v1  ;;  %v1486_v29 = vrot.slane %v1400_v26, 4  ;;  %v1480_v30 = vrot.slane %v1399_v12, 4 }
 0x1b7   :  { %v1768_v58 = vmax.f32 %v1752_v52, 0.0  ;;  %v1753_v31 = vadd.f32 %v1709_v54, %v1655_v27  ;;  %v1475_v33 = vadd.f32 %v1474_v11, %v1398_v15  ;;  %v1492_v34 = vrot.slane %v1401_v28, 4 }
 0x1b8   :  { %1782 = vst [vmem:[#allocation10 + $0x40] sm:$0xff] %v1766_v16  ;;  %v1767_v35 = vmax.f32 %v1751_v47, 0.0  ;;  %v1487_v36 = vadd.f32 %v1486_v29, %v1400_v26  ;;  %v1481_v9 = vadd.f32 %v1480_v30, %v1399_v12  ;;  %v1615_v24 = vrot.slane %v2388_v38, %v2248_v18 }
 0x1b9   :  { %1784 = vst [vmem:[#allocation10 + $0x50] sm:$0xff] %v1768_v58  ;;  %v1769_v37 = vmax.f32 %v1753_v31, 0.0  ;;  %v1476_v40 = vrot.slane %v1475_v33, 2  ;;  %v1493_v41 = vadd.f32 %v1492_v34, %v1401_v28  ;;  %v1623_v17 = vrot.slane %v2388_v38, %v2251_v21 }
 0x1ba   :  { %1783 = vst [vmem:[#allocation10 + $0x48] sm:$0xff] %v1767_v35  ;;  %v1488_v43 = vrot.slane %v1487_v36, 2  ;;  %v1482_v44 = vrot.slane %v1481_v9, 2  ;;  %v1713_v20 = vrot.slane %v2390_v39, %v2248_v18  ;;  %v1619_v42 = vrot.slane %v2388_v38, %v2254_v22 }
 0x1bb   :  { %1785 = vst [vmem:[#allocation10 + $0x58] sm:$0xff] %v1769_v37  ;;  %v1477_v0 = vadd.f32 %v1476_v40, %v1475_v33  ;;  %v1494_v45 = vrot.slane %v1493_v41, 2  ;;  %v1721_v4 = vrot.slane %v2390_v39, %v2251_v21  ;;  %v1627_v1 = vrot.slane %v2388_v38, %v2257_v25 }
 0x1bc   :  { %v1489_v48 = vadd.f32 %v1488_v43, %v1487_v36  ;;  %v1483_v49 = vadd.f32 %v1482_v44, %v1481_v9  ;;  %v1725_v11 = vrot.slane %v2390_v39, %v2257_v25 }
 0x1bd   :  { %v1478_v50 = vrot.slane %v1477_v0, 1  ;;  %v1495_v51 = vadd.f32 %v1494_v45, %v1493_v41 }
 0x1be   :  { %v1490_v53 = vrot.slane %v1489_v48, 1  ;;  %v1484_v55 = vrot.slane %v1483_v49, 1 }
 0x1bf   :  { %v1479_v56 = vadd.f32 %v1478_v50, %v1477_v0  ;;  %v1496_v61 = vrot.slane %v1495_v51, 1 }
 0x1c0   :  { %v1491_v59 = vadd.f32 %v1490_v53, %v1489_v48  ;;  %v1485_v2 = vadd.f32 %v1484_v55, %v1483_v49 }
 0x1c1   :  { %v1510_v3 = vmul.f32 0.125, %v1479_v56  ;;  %v1497_v60 = vadd.f32 %v1496_v61, %v1495_v51 }
 0x1c2   :  { %v1512_v46 = vmul.f32 0.125, %v1491_v59  ;;  %v1511_v10 = vmul.f32 0.125, %v1485_v2 }
 0x1c3   :  { %v1526_v62 = vadd.f32 1e-05, %v1510_v3  ;;  %v1513_v19 = vmul.f32 0.125, %v1497_v60 }
 0x1c4   :  { %v1528_v6 = vadd.f32 1e-05, %v1512_v46  ;;  %v1527_v7 = vadd.f32 1e-05, %v1511_v10 }
 0x1c5   :  { %1967 = vrsqrt.f32 %v1526_v62  ;;  %v1529_v57 = vadd.f32 1e-05, %v1513_v19 }
 0x1c6   :  { %1969 = vrsqrt.f32 %v1528_v6 }
 0x1c7   :  { %1971 = vrsqrt.f32 %v1527_v7 }
 0x1c8   :  { %1973 = vrsqrt.f32 %v1529_v57 }
 0x1cf   :  { %v1968_v54 = vpop.eup %1967 }
 0x1d0   :  { %v1970_v32 = vpop.eup %1969  ;;  %v1558_v63 = vmul.f32 %v1968_v54, %v2411_v13  ;;  %v1717_v13 = vrot.slane %v2390_v39, %v2254_v22 }
 0x1d1   :  { %v1972_v8 = vpop.eup %1971  ;;  %v1560_v15 = vmul.f32 %v1970_v32, %v2415_v5 }
 0x1d2   :  { %v1974_v26 = vpop.eup %1973  ;;  %v1656_v12 = vmul.f32 %v1615_v24, %v1558_v63  ;;  %v1559_v52 = vmul.f32 %v1972_v8, %v2418_v14 }
 0x1d3   :  { %v1658_v18 = vmul.f32 %v1623_v17, %v1560_v15  ;;  %v1561_v27 = vmul.f32 %v1974_v26, %v2423_v23 }
 0x1d4   :  { %v1754_v5 = vadd.f32 %v1713_v20, %v1656_v12  ;;  %v1657_v28 = vmul.f32 %v1619_v42, %v1559_v52 }
 0x1d5   :  { %v1756_v16 = vadd.f32 %v1721_v4, %v1658_v18  ;;  %v1659_v21 = vmul.f32 %v1627_v1, %v1561_v27 }
 0x1d6   :  { %v1770_v47 = vmax.f32 %v1754_v5, 0.0  ;;  %v1755_v29 = vadd.f32 %v1717_v13, %v1657_v28 }
 0x1d7   :  { %v1772_v38 = vmax.f32 %v1756_v16, 0.0  ;;  %v1757_v30 = vadd.f32 %v1725_v11, %v1659_v21 }
 0x1d8   :  { %1786 = vst [vmem:[#allocation10 + $0x60] sm:$0xff] %v1770_v47  ;;  %v1771_v14 = vmax.f32 %v1755_v29, 0.0 }
 0x1d9   :  { %1788 = vst [vmem:[#allocation10 + $0x70] sm:$0xff] %v1772_v38  ;;  %v1773_v22 = vmax.f32 %v1757_v30, 0.0 }
 0x1da   :  { %1787 = vst [vmem:[#allocation10 + $0x68] sm:$0xff] %v1771_v14 }
 0x1db   :  { %1789 = vst [vmem:[#allocation10 + $0x78] sm:$0xff] %v1773_v22 }
 0x1dc   :  { %2074 = shalt.err (!%p2071_p8)
}
 0x1dd   :  { %s2075_s19 = scalar_lea.hbm %s2468_s5, 2048 }
 0x1de   :  { %p2076_p9 = scmp.ne.s32.totalorder %s2468_s5, %s2075_s19  ;;  %p2079_p10 = scmp.lt.u32.totalorder %s2075_s19, %s2468_s5 }
 0x1e0   :  { %p2081_p11 = pnand %p2079_p10, %p2076_p9 }
 0x1e2   :  { %2084 = shalt.err (!%p2081_p11)
}
 0x1e3   :  { %1799 = dma.vmem_to_hbm [thread:$0]  %s1797_s15, 2048, %s2468_s5, [#allocation4]  }
 0x1e4   :  { %2091 = dma.done.wait [#allocation4], 2048  }
 0x1e5   :  { %2092 = vsyncadd [#allocation4], 4294965248 }
 0x1e6   :  { %1803 = vsyncpa [#allocation3], 1 }
 0x1e7   :  { %1804 = vsyncpa [#allocation6], 1 }
 0x1e8   :  { %1805 = vsyncpa [#allocation9], 1 }
 0x1e9   :  { %1806 = vsyncpa [#allocation4], 1 }

</bundles_post_ra>
